<compile_context>
chip_gen: v5e
topology: v5e:2x2
jax: 0.10.0
libtpu: 0.0.40
codegen_flags: <defaults>
</compile_context>

<pallas_src>
import functools

import jax
import jax.numpy as jnp
from jax import lax
from jax.experimental import pallas as pl
from jax.experimental.pallas import tpu as pltpu


# ----------------------------------------------------------------------------
# Padding / preprocessing helpers (wrapper-side, one-time O(N*F) / O(N^2) XLA ops).
# ----------------------------------------------------------------------------
def _round_up(v, m):
    return ((v + m - 1) // m) * m


def _pad2d(a, rows, cols):
    return jnp.pad(a, ((0, rows - a.shape[0]), (0, cols - a.shape[1])))


def _prep_adj(adj, npad):
    # Structural {0,1} adjacency streamed as int8 -> 4x less HBM traffic than f32,
    # and degrees are always the UNWEIGHTED structural counts (review correctness note).
    return _pad2d((adj != 0).astype(jnp.int8), npad, npad)


def _prep_feats(x, npad, fpad):
    xp = _pad2d(x.astype(jnp.float32), npad, fpad)
    # Row-normalized features (per-row clamp ~ torch cosine_similarity eps); built once.
    xn = xp * lax.rsqrt(jnp.maximum(jnp.sum(xp * xp, axis=1, keepdims=True), 1e-16))
    return xp, xn


def _pick_block_rows(npad, block_rows):
    # npad is a multiple of 128, so 128 always divides it.
    return block_rows if (block_rows % 128 == 0 and npad % block_rows == 0) else 128


# ----------------------------------------------------------------------------
# Kernel 1: standalone GNNGuard edge-weight computation (the spec module).
#   inputs : adj int8 (Np,Np) source-row blocks, xn (Np,Fp) normalized feats (row blocks),
#            xnT (Fp,Np) normalized feats transposed (resident, lane-dense RHS).
#   output : w (Np,Np) weighted adjacency INCLUDING self-loop weights on the diagonal.
#   tiling : grid over (R,Np) source-row blocks; "parallel" row axis (megacore on v7x).
# ----------------------------------------------------------------------------
def _gnnguard_kernel(adj_ref, xn_ref, xnT_ref, w_ref, *, threshold):
    i = pl.program_id(0)
    r, n = adj_ref.shape
    row0 = i * r

    ef = adj_ref[...].astype(jnp.float32)               # (r, n) {0,1}, cast in VMEM
    edge = ef != 0.0

    # Cosine similarity of every (src in block, dst) pair: plain [r,F]x[F,N] MXU matmul.
    cos = jnp.dot(xn_ref[...], xnT_ref[...], preferred_element_type=jnp.float32)  # (r, n)

    keep = jnp.logical_and(cos >= threshold, edge)
    s = jnp.where(keep, cos, 0.0)
    rowsum = jnp.sum(s, axis=1, keepdims=True)                          # (r, 1)
    inv_rowsum = 1.0 / jnp.where(rowsum == 0.0, 1.0, rowsum)            # exact (r,1) divide
    # Pruned edges keep exp(0) = 1 (matches the torch reference); non-edges stay 0.
    w = jnp.where(edge, jnp.exp(s * inv_rowsum), 0.0)                   # (r, n)

    deg = jnp.sum(jnp.where(keep, 1.0, 0.0), axis=1, keepdims=True)     # nonzero count per row
    self_w = jnp.exp(1.0 / (deg + 1.0))                                 # (r, 1)

    # Self-loop weights sit on the diagonal entries of this row block.
    rloc = lax.broadcasted_iota(jnp.int32, (r, n), 0)
    cloc = lax.broadcasted_iota(jnp.int32, (r, n), 1)
    w_ref[...] = jnp.where(cloc == rloc + row0, self_w, w)


def gnnguard_weights(adj, x, *, threshold=0.1, block_rows=128):
    n = adj.shape[0]
    f = x.shape[1]
    npad = _round_up(n, 128)
    fpad = _round_up(f, 128)
    r = _pick_block_rows(npad, block_rows)

    adj_i8 = _prep_adj(adj, npad)
    _, xn = _prep_feats(x, npad, fpad)
    xnT = xn.T                                           # (fpad, npad), lane-dense RHS

    kernel = functools.partial(_gnnguard_kernel, threshold=threshold)
    w = pl.pallas_call(
        kernel,
        out_shape=jax.ShapeDtypeStruct((npad, npad), jnp.float32),
        grid=(npad // r,),
        in_specs=[
            pl.BlockSpec((r, npad), lambda i: (i, 0)),   # adj source-row block (int8, pipelined)
            pl.BlockSpec((r, fpad), lambda i: (i, 0)),   # normalized feature row block
            pl.BlockSpec((fpad, npad), lambda i: (0, 0)),  # normalized feats^T, resident
        ],
        out_specs=pl.BlockSpec((r, npad), lambda i: (i, 0)),
        compiler_params=pltpu.CompilerParams(
            dimension_semantics=("parallel",),           # independent row blocks -> megacore on v7x
            vmem_limit_bytes=64 * 1024 * 1024),
    )(adj_i8, xn, xnT)
    return w[:n, :n]


# ----------------------------------------------------------------------------
# Kernel 2: fused GNNGuard + GraphConv layer.
#   Streams adj as int8 (R,Np) source-row blocks; builds the guard weights for the block in
#   VMEM and immediately aggregates into a resident TRANSPOSED (Fout,Np) accumulator — the
#   (N,N) weighted adjacency never hits HBM.  Degrees (incl. self loop) come from the same
#   streamed blocks (lane-dense (1,Np) in-degree scratch).  Theta is applied before
#   aggregation (Fin >= Fout), and the self-loop edges are folded onto the block's diagonal
#   columns so a single dot_general handles all edges.
# ----------------------------------------------------------------------------
def _guard_graphconv_kernel(adj_ref, x_ref, xnT_ref, theta_ref, bias_ref, o_ref,
                            din_scr, *, threshold, apply_relu):
    i = pl.program_id(0)
    nblk = pl.num_programs(0)
    r, n = adj_ref.shape
    row0 = i * r

    @pl.when(i == 0)
    def _init():
        o_ref[...] = jnp.zeros_like(o_ref)
        din_scr[...] = jnp.ones_like(din_scr)            # self loop contributes 1 per destination

    ef = adj_ref[...].astype(jnp.float32)                # (r, n) {0,1}, cast in VMEM
    edge = ef != 0.0

    # Unweighted in-degree accumulation into a lane-dense (1, n) scratch.
    din_scr[...] += jnp.sum(ef, axis=0, keepdims=True)

    # ---------------- GNNGuard edge weights for this source-row block ----------------
    x_blk = x_ref[...]                                   # (r, f) raw features of the block
    xh_blk = x_blk * lax.rsqrt(
        jnp.maximum(jnp.sum(x_blk * x_blk, axis=1, keepdims=True), 1e-16))
    cos = jnp.dot(xh_blk, xnT_ref[...], preferred_element_type=jnp.float32)   # (r, n)
    keep = jnp.logical_and(cos >= threshold, edge)
    s = jnp.where(keep, cos, 0.0)
    rowsum = jnp.sum(s, axis=1, keepdims=True)                                 # (r, 1)
    inv_rowsum = 1.0 / jnp.where(rowsum == 0.0, 1.0, rowsum)                   # exact divide
    # Pruned edges keep exp(0) = 1, matching the torch reference; non-edges stay 0.
    # NOTE: with int8 adj the crit-unit may shift to the EUP exp() over (r, n) — re-profile.
    w = jnp.where(edge, jnp.exp(s * inv_rowsum), 0.0)                          # (r, n)
    deg = jnp.sum(jnp.where(keep, 1.0, 0.0), axis=1, keepdims=True)            # (r, 1)
    self_w = jnp.exp(1.0 / (deg + 1.0))                                        # (r, 1)

    # Fold the block's self-loop weights onto its own diagonal columns (structural adj has
    # no self loops, so these entries were 0).
    rloc = lax.broadcasted_iota(jnp.int32, (r, n), 0)
    cloc = lax.broadcasted_iota(jnp.int32, (r, n), 1)
    w = jnp.where(cloc == rloc + row0, self_w, w)

    # ---------------- GraphConv (norm='both'), Theta applied before aggregation ------
    d_out = jnp.sum(ef, axis=1, keepdims=True) + 1.0                           # (r, 1) incl. self loop
    h_blk = jnp.dot(x_blk * lax.rsqrt(d_out), theta_ref[...],
                    preferred_element_type=jnp.float32)                        # (r, fout)

    # Transposed accumulation: out_T[fo, dst] += sum_src h[src, fo] * w[src, dst].
    # Contracting dim 0 of both only transposes the SMALL (r, fout) operand.
    o_ref[...] += lax.dot_general(h_blk, w, (((0,), (0,)), ((), ())),
                                  preferred_element_type=jnp.float32)

    @pl.when(i == nblk - 1)
    def _finalize():
        out = o_ref[...] * lax.rsqrt(din_scr[...]) + bias_ref[...]
        if apply_relu:
            out = jnp.maximum(out, 0.0)
        o_ref[...] = out


def guard_graphconv(adj, x, theta, bias, *, threshold=0.1, apply_relu=False, block_rows=128):
    n = adj.shape[0]
    f = x.shape[1]
    fout = theta.shape[1]
    npad = _round_up(n, 128)
    fpad = _round_up(f, 128)
    fopad = _round_up(fout, 8)                           # lane axis of the accumulator is N
    r = _pick_block_rows(npad, block_rows)

    adj_i8 = _prep_adj(adj, npad)
    xp, xn = _prep_feats(x, npad, fpad)
    xnT = xn.T                                           # (fpad, npad), lane-dense RHS
    thetap = _pad2d(theta.astype(jnp.float32), fpad, fopad)
    bias_t = _pad2d(jnp.asarray(bias, jnp.float32).reshape(-1, 1), fopad, 1)   # (fopad, 1)

    kernel = functools.partial(_guard_graphconv_kernel,
                               threshold=threshold, apply_relu=apply_relu)
    # TODO(synk): for very large N on v7x (64 MiB VMEM / 2 TCs), add a destination-column
    # grid axis (per-core partial accumulators) instead of keeping xnT / out_T full-width.
    out_t = pl.pallas_call(
        kernel,
        out_shape=jax.ShapeDtypeStruct((fopad, npad), jnp.float32),
        grid=(npad // r,),
        in_specs=[
            pl.BlockSpec((r, npad), lambda i: (i, 0)),      # adj source-row block (int8)
            pl.BlockSpec((r, fpad), lambda i: (i, 0)),      # raw feature row block
            pl.BlockSpec((fpad, npad), lambda i: (0, 0)),   # normalized feats^T, resident
            pl.BlockSpec((fpad, fopad), lambda i: (0, 0)),  # theta, resident
            pl.BlockSpec((fopad, 1), lambda i: (0, 0)),     # bias (transposed), resident
        ],
        out_specs=pl.BlockSpec((fopad, npad), lambda i: (0, 0)),  # resident (Fout, N) accumulator
        scratch_shapes=[
            pltpu.VMEM((1, npad), jnp.float32),             # lane-dense in-degree accumulator
        ],
        compiler_params=pltpu.CompilerParams(
            dimension_semantics=("arbitrary",),             # reduction over source-row blocks
            vmem_limit_bytes=64 * 1024 * 1024),
    )(adj_i8, xp, xnT, thetap, bias_t)
    return out_t.T[:n, :fout]


# ----------------------------------------------------------------------------
# Full GCNGuard forward (hids=[16], bn=False, eval-mode dropout).
# ----------------------------------------------------------------------------
def gcnguard_forward(adj, x, theta1, bias1, theta2, bias2, *, threshold=0.1, block_rows=128):
    # conv1 = [GNNGuard, GraphConv, ReLU, Dropout, GNNGuard]; conv2 = GraphConv.
    h = guard_graphconv(adj, x, theta1, bias1, threshold=threshold,
                        apply_relu=True, block_rows=block_rows)
    # TODO(synk): nn.Dropout between layers treated as identity (eval-mode semantics).
    out = guard_graphconv(adj, h, theta2, bias2, threshold=threshold,
                          apply_relu=False, block_rows=block_rows)
    return out


if __name__ == "__main__":
    key = jax.random.PRNGKey(0)
    N, in_feats, hid, out_feats = 256, 64, 16, 8        # small; 2 row blocks of 128 per kernel
    k1, k2, k3, k4 = jax.random.split(key, 4)

    # Random symmetric structural adjacency without self loops.
    upper = (jax.random.uniform(k1, (N, N)) < 0.05).astype(jnp.float32)
    upper = jnp.triu(upper, k=1)
    adj = upper + upper.T

    # Node features.
    x = jax.random.normal(k2, (N, in_feats), dtype=jnp.float32)

    # Deterministic parameter init (xavier_uniform like dgl GraphConv, zero bias).
    def glorot(k, shape):
        lim = (6.0 / (shape[0] + shape[1])) ** 0.5
        return jax.random.uniform(k, shape, jnp.float32, -lim, lim)

    theta1 = glorot(k3, (in_feats, hid))
    bias1 = jnp.zeros((hid,), jnp.float32)
    theta2 = glorot(k4, (hid, out_feats))
    bias2 = jnp.zeros((out_feats,), jnp.float32)

    # Standalone GNNGuard module output (dense weighted adjacency incl. self loops).
    w = gnnguard_weights(adj, x, threshold=0.1)
    # Fused end-to-end GCNGuard forward.
    out = gcnguard_forward(adj, x, theta1, bias1, theta2, bias2, threshold=0.1)

    jax.block_until_ready((w, out))
    assert w.shape == (N, N) and out.shape == (N, out_feats)
    assert bool(jnp.isfinite(w).all()) and bool(jnp.isfinite(out).all())
    print("KERNEL_OK")
</pallas_src>

<mosaic_0001>
module attributes {stable_mosaic.version = 11 : i64} {
  func.func @_gnnguard_kernel(%arg0: i32, %arg1: memref<128x256xi8, #tpu.memory_space<vmem>>, %arg2: memref<128x128xf32, #tpu.memory_space<vmem>>, %arg3: memref<128x256xf32, #tpu.memory_space<vmem>>, %arg4: memref<128x256xf32, #tpu.memory_space<vmem>>) attributes {dimension_semantics = [#tpu.dimension_semantics<parallel>], iteration_bounds = array<i64: 2>, scalar_prefetch = 0 : i64, scratch_operands = 0 : i64, tpu.core_type = #tpu.core_type<tc>, window_params = [{transform_indices = @transform_0, window_bounds = array<i64: 128, 256>}, {transform_indices = @transform_1, window_bounds = array<i64: 128, 128>}, {pipeline_mode = #tpu.pipeline_mode<synchronous>, transform_indices = @transform_2, window_bounds = array<i64: 128, 256>}, {transform_indices = @transform_3, window_bounds = array<i64: 128, 256>}]} {
    %c128_i32 = arith.constant 128 : i32
    %0 = arith.muli %arg0, %c128_i32 : i32
    %c0 = arith.constant 0 : index
    %c0_0 = arith.constant 0 : index
    %1 = vector.load %arg1[%c0, %c0_0] : memref<128x256xi8, #tpu.memory_space<vmem>>, vector<128x256xi8>
    %2 = arith.sitofp %1 : vector<128x256xi8> to vector<128x256xf32>
    %cst = arith.constant 0.000000e+00 : f32
    %3 = vector.broadcast %cst : f32 to vector<128x256xf32>
    %4 = arith.cmpf one, %2, %3 : vector<128x256xf32>
    %c0_1 = arith.constant 0 : index
    %c0_2 = arith.constant 0 : index
    %5 = vector.load %arg2[%c0_1, %c0_2] : memref<128x128xf32, #tpu.memory_space<vmem>>, vector<128x128xf32>
    %c0_3 = arith.constant 0 : index
    %c0_4 = arith.constant 0 : index
    %6 = vector.load %arg3[%c0_3, %c0_4] : memref<128x256xf32, #tpu.memory_space<vmem>>, vector<128x256xf32>
    %cst_5 = arith.constant dense<0.000000e+00> : vector<128x256xf32>
    %7 = tpu.matmul %5, %6, %cst_5 {dimension_numbers = #tpu.dot_dimension_numbers<[1], [0], [0], [1], [0, 0, 1, 1], [], []>} : vector<128x128xf32>, vector<128x256xf32>, vector<128x256xf32> -> vector<128x256xf32>
    %cst_6 = arith.constant 1.000000e-01 : f32
    %8 = vector.broadcast %cst_6 : f32 to vector<128x256xf32>
    %9 = arith.cmpf oge, %7, %8 : vector<128x256xf32>
    %10 = arith.andi %9, %4 : vector<128x256xi1>
    %cst_7 = arith.constant 0.000000e+00 : f32
    %11 = vector.broadcast %cst_7 : f32 to vector<128x256xf32>
    %12 = arith.select %10, %7, %11 : vector<128x256xi1>, vector<128x256xf32>
    %cst_8 = arith.constant dense<0.000000e+00> : vector<128xf32>
    %13 = vector.multi_reduction <add>, %12, %cst_8 [1] : vector<128x256xf32> to vector<128xf32>
    %14 = vector.shape_cast %13 : vector<128xf32> to vector<128x1xf32>
    %cst_9 = arith.constant 0.000000e+00 : f32
    %15 = vector.broadcast %cst_9 : f32 to vector<128x1xf32>
    %16 = arith.cmpf oeq, %14, %15 : vector<128x1xf32>
    %cst_10 = arith.constant 1.000000e+00 : f32
    %17 = vector.broadcast %cst_10 : f32 to vector<128x1xf32>
    %18 = arith.select %16, %17, %14 : vector<128x1xi1>, vector<128x1xf32>
    %cst_11 = arith.constant 1.000000e+00 : f32
    %19 = vector.broadcast %cst_11 : f32 to vector<128x1xf32>
    %20 = arith.divf %19, %18 : vector<128x1xf32>
    %21 = vector.broadcast %20 : vector<128x1xf32> to vector<128x256xf32>
    %22 = arith.mulf %12, %21 : vector<128x256xf32>
    %23 = math.exp %22 : vector<128x256xf32>
    %cst_12 = arith.constant 0.000000e+00 : f32
    %24 = vector.broadcast %cst_12 : f32 to vector<128x256xf32>
    %25 = arith.select %4, %23, %24 : vector<128x256xi1>, vector<128x256xf32>
    %cst_13 = arith.constant 1.000000e+00 : f32
    %cst_14 = arith.constant 0.000000e+00 : f32
    %26 = vector.broadcast %cst_13 : f32 to vector<128x256xf32>
    %27 = vector.broadcast %cst_14 : f32 to vector<128x256xf32>
    %28 = arith.select %10, %26, %27 : vector<128x256xi1>, vector<128x256xf32>
    %cst_15 = arith.constant dense<0.000000e+00> : vector<128xf32>
    %29 = vector.multi_reduction <add>, %28, %cst_15 [1] : vector<128x256xf32> to vector<128xf32>
    %30 = vector.shape_cast %29 : vector<128xf32> to vector<128x1xf32>
    %cst_16 = arith.constant 1.000000e+00 : f32
    %31 = vector.broadcast %cst_16 : f32 to vector<128x1xf32>
    %32 = arith.addf %30, %31 : vector<128x1xf32>
    %cst_17 = arith.constant 1.000000e+00 : f32
    %33 = vector.broadcast %cst_17 : f32 to vector<128x1xf32>
    %34 = arith.divf %33, %32 : vector<128x1xf32>
    %35 = math.exp %34 : vector<128x1xf32>
    %36 = tpu.iota {dimensions = array<i32: 0>} : vector<128x256xi32>
    %37 = tpu.iota {dimensions = array<i32: 1>} : vector<128x256xi32>
    %38 = vector.broadcast %0 : i32 to vector<128x256xi32>
    %39 = arith.addi %36, %38 : vector<128x256xi32>
    %40 = arith.cmpi eq, %37, %39 : vector<128x256xi32>
    %41 = vector.shape_cast %35 : vector<128x1xf32> to vector<128x1xf32>
    %42 = vector.broadcast %41 : vector<128x1xf32> to vector<128x256xf32>
    %43 = arith.select %40, %42, %25 : vector<128x256xi1>, vector<128x256xf32>
    %c0_18 = arith.constant 0 : index
    %c0_19 = arith.constant 0 : index
    %44 = vector.load %arg4[%c0_18, %c0_19] : memref<128x256xf32, #tpu.memory_space<vmem>>, vector<128x256xf32>
    tpu.vector_store %arg4[%c0_18, %c0_19], %43 {strides = array<i32>} : memref<128x256xf32, #tpu.memory_space<vmem>>, vector<128x256xf32>,
    return
  }
  func.func @transform_0(%arg0: i32) -> (i32, i32) {
    %c0_i32 = arith.constant 0 : i32
    %c0_i32_0 = arith.constant 0 : i32
    return %arg0, %c0_i32 : i32, i32
  }
  func.func @transform_1(%arg0: i32) -> (i32, i32) {
    %c0_i32 = arith.constant 0 : i32
    %c0_i32_0 = arith.constant 0 : i32
    return %arg0, %c0_i32 : i32, i32
  }
  func.func @transform_2(%arg0: i32) -> (i32, i32) {
    %c0_i32 = arith.constant 0 : i32
    %c0_i32_0 = arith.constant 0 : i32
    %c0_i32_1 = arith.constant 0 : i32
    return %c0_i32, %c0_i32_0 : i32, i32
  }
  func.func @transform_3(%arg0: i32) -> (i32, i32) {
    %c0_i32 = arith.constant 0 : i32
    %c0_i32_0 = arith.constant 0 : i32
    return %arg0, %c0_i32 : i32, i32
  }
}

</mosaic_0001>

<bundles_post_ra>
// kernel: tpu_custom_call.1
= control target key start
LH: loop header
LB: loop body
LE: loop exit
PB: predicated region body
PF: predicated region fallthrough
CT: control target
= control target key end

     0   :  { %s3779_s0 = inlined_call_operand.hbm [shape: s8[256,256], index: 0, kind: input, shape index: {}]   ;;  %s3780_s1 = inlined_call_operand.hbm [shape: f32[256,128], index: 1, kind: input, shape index: {}]   ;;  %s3781_s2 = inlined_call_operand.hbm [shape: f32[128,256], index: 2, kind: input, shape index: {}]   ;;  %s3782_s3 = inlined_call_operand.hbm [shape: f32[256,256], index: 3, kind: output, shape index: {}]  }
   0x1   :  { %3847 = sst [smem:[#allocation45_spill]] %s3781_s2 }
   0x2   :  { %8 = vsyncpa [#allocation3], 0 }
   0x3   :  { %10 = vsyncpa [#allocation3 + $0x1], 0 }
   0x4   :  { %11 = vsyncpa [#allocation6], 0 }
   0x5   :  { %13 = vsyncpa [#allocation6 + $0x1], 0 }
   0x6   :  { %14 = vsyncpa [#allocation4], 0 }
   0x7   :  { %16 = vsyncpa [#allocation4 + $0x1], 0  ;;  %s2186_s12 = smov 0   ;;  %s2188_s13 = smov 0  }
   0x8   :  { %s2190_s14 = smov 0   ;;  %s2192_s15 = smov 0  }
   0x9 LB: > { %s2207_s16 = sadd.s32 4294967295, %s2156_s15   ;;  %s1703_s17 = sadd.s32 4294967294, %s2156_s15   ;;  %s2156_s15 = sphi %s2192_s15, %s4054_s15   ;;  %s2152_s14 = sphi %s2190_s14, %s4053_s14   ;;  %s2148_s13 = sphi %s2188_s13, %s4052_s13   ;;  %s2144_s12 = sphi %s2186_s12, %s4051_s12  }
   0xa   : > { %p42_p0 = scmp.ne.s32.totalorder %s2148_s13, %s2144_s12  ;;  %p43_p1 = scmp.eq.s32.totalorder %s2207_s16, 0 }
   0xb   : > { %p113_p2 = scmp.eq.s32.totalorder %s2207_s16, 1  ;;  %p119_p3 = scmp.eq.s32.totalorder %s1703_s17, 1 }
   0xc   : > { %p2216_p4 = por %p43_p1, %p42_p0  ;;  %p1704_p5 = scmp.ge.s32.totalorder %s2156_s15, 1 }
   0xd   : > { %p2221_p6 = por %p119_p3, %p42_p0  ;;  %p126_p7 = scmp.lt.s32.totalorder %s2156_s15, 3 }
   0xe   : > { %s3850_s2 = sld [smem:[#allocation45_spill]]  ;;  %s2158_s24 = smov [#allocation7]  }
   0xf   : > { %p2229_p8 = pnand %p1704_p5, %p126_p7  ;;  %s139_s25 = sshll.u32 %s2158_s24, 4  ;;  %s140_s25 = int_to_ptr.vmem [resolvable:$true] %s139_s25 }
  0x10   : > { %s2239_s26 = sadd.s32 1, %s2156_s15   ;;  %s3783_s27 = smov 256  }
  0x11   : > { %p1773_p9 = pneg %p2229_p8  ;;  %s2160_s28 = smov 16  }
  0x12   : > { %s26_s29 = ssub.s32 %s2156_s15, %s2239_s26  ;;  %s29_s30 = sadd.s32 1, %s2152_s14 }
  0x13   : > { %p1774_p10 = pnand %p1773_p9, %p43_p1  ;;  %p27_p12 = scmp.eq.s32.totalorder %s26_s29, 0 }
  0x14   : > { %s137_s22 = sshll.u32 %s3850_s2, 4  ;;  %p36_p13 = scmp.ne.s32.totalorder %s2152_s14, %s2148_s13  ;;  %s138_s22 = int_to_ptr.hbm [resolvable:$true] %s137_s22 }
  0x15   : > { %1776 = dma.hbm_to_vmem [thread:$0]  (!%p1774_p10), %s138_s22, 4096, %s140_s25, [#allocation6], %s3783_s27, %s3783_s27, %s2160_s28  }
  0x16   : > { %p37_p0 = scmp.eq.s32.totalorder %s2156_s15, 0  ;;  %p1789_p3 = scmp.lt.s32.totalorder %s2156_s15, 2 }
  0x17   : > { %s2252_s4 = scalar_select %p27_p12, %s2152_s14, %s29_s30  }
  0x18   : > { %p38_p5 = por %p37_p0, %p36_p13  ;;  %p2256_p7 = por %p113_p2, %p36_p13 }
  0x19   : > { %3852 = sst [smem:[#allocation13_spill]] %s2252_s4  ;;  %s2261_s6 = sand.u32 1, %s2152_s14  }
  0x1a   : > { %s1727_s7 = sshll.u32 %s2156_s15, 6  ;;  %s1707_s8 = sshll.u32 %s2261_s6, 6 }
  0x1b   : > { %s163_s11 = scalar_lea.hbm %s3779_s0, %s1727_s7  ;;  %s157_s20 = scalar_lea.vmem [#allocation2], %s1707_s8 }
  0x1c   : > { %s164_s17 = sshll.u32 %s163_s11, 4  ;;  %s166_s21 = sshll.u32 %s157_s20, 4  ;;  %s165_s17 = int_to_ptr.hbm [resolvable:$true] %s164_s17  ;;  %s167_s21 = int_to_ptr.vmem [resolvable:$true] %s166_s21 }
  0x1d   : > { %p2270_p2 = pnand %p1789_p3, %p38_p5  ;;  %s176_s24 = sand.u32 1, %s2156_s15  }
  0x1e   : > { %s1711_s25 = sshll.u32 %s2261_s6, 7  ;;  %s154_s29 = scalar_lea.sflag [#allocation3], %s2261_s6 }
  0x1f   : > { %s2022_s30 = sshra.s32 %s165_s17, 4  ;;  %p2026_p10 = pneg %p2270_p2  ;;  %s2023_s30 = int_to_ptr.hbm [resolvable:$true] %s2022_s30 }
  0x20   : > { %s2024_s27 = scalar_lea.hbm %s2023_s30, 64  ;;  %s2029_s9 = scalar_lea.hbm %s3779_s0, 128 }
  0x21   : > { %p2025_p9 = scmp.ne.s32.totalorder %s2023_s30, %s2024_s27  ;;  %p2030_p0 = scmp.lt.s32.totalorder %s2023_s30, %s3779_s0 }
  0x22   : > { %p2031_p3 = scmp.lt.s32.totalorder %s2029_s9, %s2024_s27 }
  0x23   : > { %p2027_p12 = pnand %p2026_p10, %p2025_p9 }
  0x24   : > { %p2032_p5 = por %p2031_p3, %p2030_p0 }
  0x25   : > { %p2028_p13 = pneg %p2027_p12 }
  0x27   : > { %p2033_p11 = pnand %p2032_p5, %p2028_p13 }
  0x29   : > { %2036 = shalt.err (!%p2033_p11)
}
  0x2a   : > { %s3855_s6 = smov 256   ;;  %s1728_s20 = sshll.u32 %s2156_s15, 7 }
  0x2b   : > { %1780 = dma.hbm_to_vmem [thread:$0]  (!%p2270_p2), %s165_s17, 1024, %s167_s21, %s154_s29, %s3855_s6, %s3855_s6, %s2160_s28  }
  0x2c   : > { %s180_s2 = scalar_lea.vmem [#allocation5], %s1711_s25  ;;  %s185_s10 = scalar_lea.hbm %s3780_s1, %s1728_s20 }
  0x2d   : > { %s188_s7 = sshll.u32 %s180_s2, 4  ;;  %s186_s27 = sshll.u32 %s185_s10, 4  ;;  %s189_s7 = int_to_ptr.vmem [resolvable:$true] %s188_s7  ;;  %s187_s27 = int_to_ptr.hbm [resolvable:$true] %s186_s27 }
  0x2e   : > { %s177_s30 = scalar_lea.sflag [#allocation6], %s176_s24  ;;  %s2052_s9 = sshra.s32 %s187_s27, 4  ;;  %s2053_s9 = int_to_ptr.hbm [resolvable:$true] %s2052_s9 }
  0x2f   : > { %s2054_s11 = scalar_lea.hbm %s2053_s9, 128  ;;  %s2059_s2 = scalar_lea.hbm %s3780_s1, 256 }
  0x30   : > { %p2055_p11 = scmp.ne.s32.totalorder %s2053_s9, %s2054_s11  ;;  %p2060_p13 = scmp.lt.s32.totalorder %s2053_s9, %s3780_s1 }
  0x31   : > { %p2061_p0 = scmp.lt.s32.totalorder %s2059_s2, %s2054_s11 }
  0x32   : > { %p2057_p9 = pnand %p2055_p11, %p2026_p10 }
  0x33   : > { %p2062_p3 = por %p2061_p0, %p2060_p13 }
  0x34   : > { %p2058_p12 = pneg %p2057_p9 }
  0x36   : > { %p2063_p5 = pnand %p2062_p3, %p2058_p12 }
  0x38   : > { %2066 = shalt.err (!%p2063_p5)
}
  0x39   : > { %s2161_s4 = smov 128   ;;  %s2162_s24 = smov 8  }
  0x3a   : > { %1783 = dma.hbm_to_vmem [thread:$0]  (!%p2270_p2), %s187_s27, 2048, %s189_s7, %s177_s30, %s2161_s4, %s2161_s4, %s2162_s24  }
  0x3b   : > { %200 = sbr.rel (%p2229_p8) target bundleno = 558 (0x22e), region = 32 }
  0x40   : > { %s2311_s29 = sand.u32 1, %s2148_s13  }
  0x41   : > { %s1715_s6 = sshll.u32 %s2311_s29, 6  ;;  %s203_s20 = scalar_lea.sflag [#allocation3], %s2311_s29 }
  0x42   : > { %s2315_s8 = scalar_lea.vmem [#allocation2], %s1715_s6 }
  0x43   : > { %2127 = dma.done.wait (%p2216_p4), %s203_s20, 1024  }
  0x44   : > { %2129 = vsyncadd (%p2216_p4), %s203_s20, 4294966272  ;;  %s212_s23 = sand.u32 1, %s2207_s16   ;;  %s1716_s22 = sshll.u32 %s2311_s29, 7 }
  0x45   : > { %s213_s7 = scalar_lea.sflag [#allocation6], %s212_s23  ;;  %s2323_s10 = scalar_lea.vmem [#allocation5], %s1716_s22 }
  0x46   : > { %2131 = dma.done.wait (%p2216_p4), %s213_s7, 2048  }
  0x47   : > { %2133 = vsyncadd (%p2216_p4), %s213_s7, 4294965248 }
  0x48   : > { %2135 = dma.done.wait (%p43_p1), [#allocation6], 4096  }
  0x49   : > { %2137 = vsyncadd (%p43_p1), [#allocation6], 4294963200  ;;  %v404_v0 = vld [vmem:[#allocation7 + $0xf0] sm:$0xff]  ;;  %v405_v1 = vld [vmem:[#allocation7 + $0xf8] sm:$0xff]  ;;  %s1719_s18 = sshll.u32 %s2207_s16, 7  ;;  %s1718_s27 = sshll.u32 %s2311_s29, 8 }
  0x4a   : > { %v402_v2 = vld [vmem:[#allocation7 + $0xe0] sm:$0xff]  ;;  %406 = vmatpush.msra.mxu0 %v404_v0  ;;  %1731 = vmatpush.msra.mxu2 %v404_v0  ;;  %v403_v3 = vld [vmem:[#allocation7 + $0xe8] sm:$0xff]  ;;  %v400_v4 = vld [vmem:[#allocation7 + $0xd0] sm:$0xff]  ;;  %v3800_v0 = vmov 0.0   ;;  %s3049_s30 = scalar_lea.vmem [#allocation8], %s1718_s27  ;;  %s1730_s9 = sshll.u32 %s2207_s16, 8 }
  0x4b   : > { %471 = vmatpush.msra.mxu1 %v405_v1  ;;  %1747 = vmatpush.msra.mxu3 %v405_v1  ;;  %v401_v5 = vld [vmem:[#allocation7 + $0xd8] sm:$0xff]  ;;  %v398_v6 = vld [vmem:[#allocation7 + $0xc0] sm:$0xff]  ;;  %v399_v7 = vld [vmem:[#allocation7 + $0xc8] sm:$0xff]  ;;  %s1594_s17 = scalar_lea.hbm %s3782_s3, %s1730_s9  ;;  %s1595_s16 = sshll.u32 %s3049_s30, 4  ;;  %s1596_s16 = int_to_ptr.vmem [resolvable:$true] %s1595_s16 }
  0x4c   : > { %407 = vmatpush.msra.mxu0 %v402_v2  ;;  %1732 = vmatpush.msra.mxu2 %v402_v2  ;;  %v396_v8 = vld [vmem:[#allocation7 + $0xb0] sm:$0xff]  ;;  %v397_v9 = vld [vmem:[#allocation7 + $0xb8] sm:$0xff]  ;;  %v394_v10 = vld [vmem:[#allocation7 + $0xa0] sm:$0xff]  ;;  %s1597_s2 = sshll.u32 %s1594_s17, 4  ;;  %s1582_s21 = scalar_lea.sflag [#allocation4], %s2311_s29  ;;  %s1598_s2 = int_to_ptr.hbm [resolvable:$true] %s1597_s2 }
  0x4d   : > { %472 = vmatpush.msra.mxu1 %v403_v3  ;;  %1748 = vmatpush.msra.mxu3 %v403_v3  ;;  %v395_v11 = vld [vmem:[#allocation7 + $0xa8] sm:$0xff]  ;;  %v392_v12 = vld [vmem:[#allocation7 + $0x90] sm:$0xff]  ;;  %v393_v13 = vld [vmem:[#allocation7 + $0x98] sm:$0xff]  ;;  %s2096_s25 = sshra.s32 %s1598_s2, 4  ;;  %s2102_s20 = scalar_lea.hbm %s3782_s3, 512  ;;  %s2097_s25 = int_to_ptr.hbm [resolvable:$true] %s2096_s25 }
  0x4e   : > { %408 = vmatpush.msra.mxu0 %v400_v4  ;;  %1733 = vmatpush.msra.mxu2 %v400_v4  ;;  %v390_v14 = vld [vmem:[#allocation7 + $0x80] sm:$0xff]  ;;  %v391_v15 = vld [vmem:[#allocation7 + $0x88] sm:$0xff]  ;;  %v388_v16 = vld [vmem:[#allocation7 + $0x70] sm:$0xff]  ;;  %s2098_s4 = scalar_lea.hbm %s2097_s25, 256  ;;  %p2103_p2 = scmp.lt.s32.totalorder %s2097_s25, %s3782_s3 }
  0x4f   : > { %473 = vmatpush.msra.mxu1 %v401_v5  ;;  %1749 = vmatpush.msra.mxu3 %v401_v5  ;;  %v389_v17 = vld [vmem:[#allocation7 + $0x78] sm:$0xff]  ;;  %v386_v18 = vld [vmem:[#allocation7 + $0x60] sm:$0xff]  ;;  %v387_v19 = vld [vmem:[#allocation7 + $0x68] sm:$0xff]  ;;  %p2099_p1 = scmp.ne.s32.totalorder %s2097_s25, %s2098_s4  ;;  %p2104_p10 = scmp.lt.s32.totalorder %s2102_s20, %s2098_s4 }
  0x50   : > { %409 = vmatpush.msra.mxu0 %v398_v6  ;;  %1734 = vmatpush.msra.mxu2 %v398_v6  ;;  %v384_v20 = vld [vmem:[#allocation7 + $0x50] sm:$0xff]  ;;  %v385_v21 = vld [vmem:[#allocation7 + $0x58] sm:$0xff]  ;;  %v382_v22 = vld [vmem:[#allocation7 + $0x40] sm:$0xff] }
  0x51   : > { %474 = vmatpush.msra.mxu1 %v399_v7  ;;  %1750 = vmatpush.msra.mxu3 %v399_v7  ;;  %v383_v23 = vld [vmem:[#allocation7 + $0x48] sm:$0xff]  ;;  %v380_v24 = vld [vmem:[#allocation7 + $0x30] sm:$0xff]  ;;  %v381_v25 = vld [vmem:[#allocation7 + $0x38] sm:$0xff]  ;;  %p2100_p4 = pnand %p2099_p1, %p2256_p7  ;;  %p2105_p11 = por %p2104_p10, %p2103_p2 }
  0x52   : > { %410 = vmatpush.msra.mxu0 %v396_v8  ;;  %1735 = vmatpush.msra.mxu2 %v396_v8  ;;  %v378_v26 = vld [vmem:[#allocation7 + $0x20] sm:$0xff]  ;;  %v379_v27 = vld [vmem:[#allocation7 + $0x28] sm:$0xff]  ;;  %v376_v28 = vld [vmem:[#allocation7 + $0x10] sm:$0xff] }
  0x53   : > { %475 = vmatpush.msra.mxu1 %v397_v9  ;;  %1751 = vmatpush.msra.mxu3 %v397_v9  ;;  %v377_v29 = vld [vmem:[#allocation7 + $0x18] sm:$0xff]  ;;  %v374_v30 = vld [vmem:[#allocation7] sm:$0xff]  ;;  %v375_v31 = vld [vmem:[#allocation7 + $0x8] sm:$0xff]  ;;  %p2101_p8 = pneg %p2100_p4 }
  0x54   : > { %411 = vmatpush.msra.mxu0 %v394_v10  ;;  %1736 = vmatpush.msra.mxu2 %v394_v10  ;;  %v358_v32 = vld [vmem:[%s2323_s10] sm:$0xff]  ;;  %v367_v34 = vld [vmem:[%s2323_s10 + $0x48] sm:$0xff]  ;;  %v368_v36 = vld [vmem:[%s2323_s10 + $0x50] sm:$0xff] }
  0x55   : > { %476 = vmatpush.msra.mxu1 %v395_v11  ;;  %1752 = vmatpush.msra.mxu3 %v395_v11  ;;  %v366_v33 = vld [vmem:[%s2323_s10 + $0x40] sm:$0xff]  ;;  %v359_v35 = vld [vmem:[%s2323_s10 + $0x8] sm:$0xff]  ;;  %v360_v37 = vld [vmem:[%s2323_s10 + $0x10] sm:$0xff]  ;;  %p2106_p9 = pnand %p2105_p11, %p2101_p8 }
  0x56   : > { %412 = vmatpush.msra.mxu0 %v392_v12  ;;  %1737 = vmatpush.msra.mxu2 %v392_v12  ;;  %v369_v38 = vld [vmem:[%s2323_s10 + $0x58] sm:$0xff]  ;;  %v362_v40 = vld [vmem:[%s2323_s10 + $0x20] sm:$0xff]  ;;  %v371_v42 = vld [vmem:[%s2323_s10 + $0x68] sm:$0xff] }
  0x57   : > { %477 = vmatpush.msra.mxu1 %v393_v13  ;;  %1753 = vmatpush.msra.mxu3 %v393_v13  ;;  %v361_v39 = vld [vmem:[%s2323_s10 + $0x18] sm:$0xff]  ;;  %v370_v41 = vld [vmem:[%s2323_s10 + $0x60] sm:$0xff]  ;;  %v363_v43 = vld [vmem:[%s2323_s10 + $0x28] sm:$0xff] }
  0x58   : > { %413 = vmatpush.msra.mxu0 %v390_v14  ;;  %1738 = vmatpush.msra.mxu2 %v390_v14  ;;  %v372_v44 = vld [vmem:[%s2323_s10 + $0x70] sm:$0xff]  ;;  %v373_v46 = vld [vmem:[%s2323_s10 + $0x78] sm:$0xff]  ;;  %v2350_v48 = vld [vmem:[%s2315_s8] sm:$0xff] }
  0x59   : > { %478 = vmatpush.msra.mxu1 %v391_v15  ;;  %1754 = vmatpush.msra.mxu3 %v391_v15  ;;  %v364_v45 = vld [vmem:[%s2323_s10 + $0x30] sm:$0xff]  ;;  %v365_v47 = vld [vmem:[%s2323_s10 + $0x38] sm:$0xff]  ;;  %v2353_v49 = vld [vmem:[%s2315_s8 + $0x8] sm:$0xff]  ;;  %v262_v50 = vunpack.c.0.s8 %v2350_v48  ;;  %v264_v58 = vunpack.c.1.s8 %v2350_v48  ;;  %v266_v14 = vunpack.c.2.s8 %v2350_v48 }
  0x5a   : > { %414 = vmatpush.msra.mxu0 %v388_v16  ;;  %1739 = vmatpush.msra.mxu2 %v388_v16  ;;  %v263_v51 = vunpack.c.0.s8 %v2353_v49  ;;  %v2358_v52 = vld [vmem:[%s2315_s8 + $0x20] sm:$0xff]  ;;  %v2363_v54 = vld [vmem:[%s2315_s8 + $0x28] sm:$0xff]  ;;  %v265_v60 = vunpack.c.1.s8 %v2353_v49  ;;  %v267_v15 = vunpack.c.2.s8 %v2353_v49 }
  0x5b   : > { %479 = vmatpush.msra.mxu1 %v389_v17  ;;  %1755 = vmatpush.msra.mxu3 %v389_v17  ;;  %v2360_v53 = vcvt.s32.f32 %v262_v50  ;;  %v278_v56 = vunpack.c.0.s8 %v2358_v52  ;;  %v279_v57 = vunpack.c.0.s8 %v2363_v54  ;;  %v2384_v3 = vcvt.s32.f32 %v264_v58  ;;  %v2483_v50 = vld [vmem:[%s2315_s8 + $0x10] sm:$0xff] }
  0x5c   : > { %415 = vmatpush.msra.mxu0 %v386_v18  ;;  %1740 = vmatpush.msra.mxu2 %v386_v18  ;;  %v2365_v55 = vcvt.s32.f32 %v263_v51  ;;  %v2389_v6 = vcvt.s32.f32 %v265_v60  ;;  %v280_v9 = vunpack.c.1.s8 %v2358_v52  ;;  %v281_v10 = vunpack.c.1.s8 %v2363_v54  ;;  %v2486_v51 = vld [vmem:[%s2315_s8 + $0x18] sm:$0xff] }
  0x5d   : > { %480 = vmatpush.msra.mxu1 %v387_v19  ;;  %1756 = vmatpush.msra.mxu3 %v387_v19  ;;  %vm3825_vm0 = vcmp.ne.f32.partialorder %v2360_v53, 0.0  ;;  %v2373_v61 = vcvt.s32.f32 %v278_v56  ;;  %v2377_v63 = vcvt.s32.f32 %v279_v57  ;;  %vm3791_vm9 = vcmp.ne.f32.partialorder %v2384_v3, 0.0 }
  0x5e   : > { %416 = vmatpush.msra.mxu0 %v384_v20  ;;  %1741 = vmatpush.msra.mxu2 %v384_v20  ;;  %vm3824_vm1 = vcmp.ne.f32.partialorder %v2365_v55, 0.0  ;;  %vm3790_vm11 = vcmp.ne.f32.partialorder %v2389_v6, 0.0  ;;  %v2407_v18 = vcvt.s32.f32 %v280_v9  ;;  %v2409_v19 = vcvt.s32.f32 %v281_v10 }
  0x5f   : > { %481 = vmatpush.msra.mxu1 %v385_v21  ;;  %1757 = vmatpush.msra.mxu3 %v385_v21  ;;  %vm3793_vm6 = vcmp.ne.f32.partialorder %v2373_v61, 0.0  ;;  %vm3792_vm7 = vcmp.ne.f32.partialorder %v2377_v63, 0.0  ;;  %v268_v58 = vunpack.c.3.s8 %v2350_v48  ;;  %v285_v60 = vunpack.c.3.s8 %v2363_v54 }
  0x60   : > { %417 = vmatpush.msra.mxu0 %v382_v22  ;;  %1742 = vmatpush.msra.mxu2 %v382_v22 }
  0x61   : > { %482 = vmatpush.msra.mxu1 %v383_v23  ;;  %1758 = vmatpush.msra.mxu3 %v383_v23 }
  0x62   : > { %418 = vmatpush.msra.mxu0 %v380_v24  ;;  %1743 = vmatpush.msra.mxu2 %v380_v24 }
  0x63   : > { %483 = vmatpush.msra.mxu1 %v381_v25  ;;  %1759 = vmatpush.msra.mxu3 %v381_v25  ;;  %v2423_v25 = vcvt.s32.f32 %v266_v14  ;;  %v2532_v14 = vcvt.s32.f32 %v285_v60 }
  0x64   : > { %419 = vmatpush.msra.mxu0 %v378_v26  ;;  %1744 = vmatpush.msra.mxu2 %v378_v26  ;;  %v2425_v26 = vcvt.s32.f32 %v267_v15 }
  0x65   : > { %484 = vmatpush.msra.mxu1 %v379_v27  ;;  %1760 = vmatpush.msra.mxu3 %v379_v27  ;;  %v282_v27 = vunpack.c.2.s8 %v2358_v52 }
  0x66   : > { %420 = vmatpush.msra.mxu0 %v376_v28  ;;  %1745 = vmatpush.msra.mxu2 %v376_v28 }
  0x67   : > { %485 = vmatpush.msra.mxu1 %v377_v29  ;;  %1761 = vmatpush.msra.mxu3 %v377_v29 }
  0x68   : > { %421 = vmatpush.msra.mxu0 %v374_v30  ;;  %1746 = vmatpush.msra.mxu2 %v374_v30  ;;  %v283_v30 = vunpack.c.2.s8 %v2363_v54  ;;  %v272_v54 = vunpack.c.1.s8 %v2483_v50 }
  0x69   : > { %486 = vmatpush.msra.mxu1 %v375_v31  ;;  %1762 = vmatpush.msra.mxu3 %v375_v31 }
  0x6a   : > { %422 = vmatmul.f32.vlgmr.msra.gmra.mxu0 %v358_v32  ;;  %446 = vmatmul.f32.vlgmr.msra.gmra.mxu2 %v366_v33 }
  0x6b   : > { %487 = vmatmul.f32.vlgmr.msra.gmra.mxu1 %v358_v32  ;;  %511 = vmatmul.f32.vlgmr.msra.gmra.mxu3 %v366_v33 }
  0x72   : > { %449 = vmatmul.f32.gmra.mxu2 %v367_v34  ;;  %425 = vmatmul.f32.gmra.mxu0 %v359_v35 }
  0x73   : > { %514 = vmatmul.f32.gmra.mxu3 %v367_v34  ;;  %490 = vmatmul.f32.gmra.mxu1 %v359_v35 }
  0x7a   : > { %452 = vmatmul.f32.gmra.mxu2 %v368_v36  ;;  %428 = vmatmul.f32.gmra.mxu0 %v360_v37 }
  0x7b   : > { %517 = vmatmul.f32.gmra.mxu3 %v368_v36  ;;  %493 = vmatmul.f32.gmra.mxu1 %v360_v37  ;;  %v2451_v37 = vcvt.s32.f32 %v282_v27 }
  0x82   : > { %455 = vmatmul.f32.gmra.mxu2 %v369_v38  ;;  %431 = vmatmul.f32.gmra.mxu0 %v361_v39 }
  0x83   : > { %520 = vmatmul.f32.gmra.mxu3 %v369_v38  ;;  %496 = vmatmul.f32.gmra.mxu1 %v361_v39 }
  0x8a   : > { %434 = vmatmul.f32.gmra.mxu0 %v362_v40  ;;  %458 = vmatmul.f32.gmra.mxu2 %v370_v41 }
  0x8b   : > { %499 = vmatmul.f32.gmra.mxu1 %v362_v40  ;;  %523 = vmatmul.f32.gmra.mxu3 %v370_v41 }
  0x92   : > { %461 = vmatmul.f32.gmra.mxu2 %v371_v42  ;;  %437 = vmatmul.f32.gmra.mxu0 %v363_v43 }
  0x93   : > { %526 = vmatmul.f32.gmra.mxu3 %v371_v42  ;;  %502 = vmatmul.f32.gmra.mxu1 %v363_v43  ;;  %v2462_v42 = vcvt.s32.f32 %v283_v30 }
  0x9a   : > { %464 = vmatmul.f32.gmra.mxu2 %v372_v44  ;;  %440 = vmatmul.f32.gmra.mxu0 %v364_v45 }
  0x9b   : > { %529 = vmatmul.f32.gmra.mxu3 %v372_v44  ;;  %505 = vmatmul.f32.gmra.mxu1 %v364_v45 }
  0xa2   : > { %467 = vmatmul.f32.gmra.mxu2 %v373_v46  ;;  %443 = vmatmul.f32.gmra.mxu0 %v365_v47 }
  0xa3   : > { %532 = vmatmul.f32.gmra.mxu3 %v373_v46  ;;  %508 = vmatmul.f32.gmra.mxu1 %v365_v47 }
  0xe7   : > { %v423_v59 = vpop.f32.mrf.mxu0 }
  0xe8   : > { %vm536_vm2 = vcmp.ge.f32.partialorder %v423_v59, 0.1  ;;  %v488_v62 = vpop.f32.mrf.mxu1 }
  0xe9   : > { %vm537_vm3 = vcmp.ge.f32.partialorder %v488_v62, 0.1  ;;  %vm568_vm4 = vmand %vm536_vm2, %vm3825_vm0 }
  0xea   : > { %vm569_vm5 = vmand %vm537_vm3, %vm3824_vm1  ;;  %v1080_v1 = vsel %vm568_vm4, 1.0, %v3800_v0  ;;  %v2382_v2 = vsel %vm568_vm4, %v423_v59, 0.0  ;;  %vm3785_vm4 = vcmp.ne.f32.partialorder %v2407_v18, 0.0  ;;  %v284_v59 = vunpack.c.3.s8 %v2358_v52 }
  0xeb   : > { %v1081_v4 = vsel %vm569_vm5, 1.0, %v3800_v0  ;;  %v2387_v5 = vsel %vm569_vm5, %v488_v62, 0.0  ;;  %vm3784_vm5 = vcmp.ne.f32.partialorder %v2409_v19, 0.0 }
  0xec   : > { %v1112_v7 = vadd.f32 %v1081_v4, %v1080_v1  ;;  %v632_v8 = vadd.f32 %v2387_v5, %v2382_v2  ;;  %v269_v1 = vunpack.c.3.s8 %v2353_v49 }
  0xed   : > { %v447_v11 = vpop.f32.mrf.mxu2 }
  0xee   : > { %vm552_vm8 = vcmp.ge.f32.partialorder %v447_v11, 0.1  ;;  %v512_v12 = vpop.f32.mrf.mxu3  ;;  %1113 = vadd.xlane.f32.xlu1 %v1112_v7  ;;  %633 = vadd.xlane.f32.xlu0 %v632_v8  ;;  %v270_v7 = vunpack.c.0.s8 %v2483_v50  ;;  %v271_v8 = vunpack.c.0.s8 %v2486_v51 }
  0xef   : > { %vm553_vm10 = vcmp.ge.f32.partialorder %v512_v12, 0.1  ;;  %v426_v13 = vpop.f32.mrf.mxu0  ;;  %vm584_vm12 = vmand %vm552_vm8, %vm3793_vm6 }
  0xf0   : > { %vm538_vm13 = vcmp.ge.f32.partialorder %v426_v13, 0.1  ;;  %v491_v16 = vpop.f32.mrf.mxu1  ;;  %vm585_vm14 = vmand %vm553_vm10, %vm3792_vm7  ;;  %v2405_v17 = vsel %vm584_vm12, %v447_v11, 0.0  ;;  %v1096_v21 = vsel %vm584_vm12, 1.0, %v3800_v0  ;;  %v2528_v11 = vcvt.s32.f32 %v268_v58 }
  0xf1   : > { %vm539_vm15 = vcmp.ge.f32.partialorder %v491_v16, 0.1  ;;  %v2411_v20 = vsel %vm585_vm14, %v512_v12, 0.0  ;;  %v1097_v22 = vsel %vm585_vm14, 1.0, %v3800_v0  ;;  %vm2419_vm2 = vmand %vm538_vm13, %vm3791_vm9  ;;  %vm3787_vm13 = vcmp.ne.f32.partialorder %v2423_v25, 0.0 }
  0xf2   : > { %v656_v23 = vadd.f32 %v2411_v20, %v2405_v17  ;;  %vm2430_vm3 = vmand %vm539_vm15, %vm3790_vm11  ;;  %v1136_v29 = vadd.f32 %v1097_v22, %v1096_v21  ;;  %v1082_v32 = vsel %vm2419_vm2, 1.0, %v3800_v0  ;;  %vm3786_vm14 = vcmp.ne.f32.partialorder %v2425_v26, 0.0  ;;  %3872 = vst [vmem:[#allocation14_spill] sm:$0xff] %v2528_v11 }
  0xf3   : > { %v1083_v33 = vsel %vm2430_vm3, 1.0, %v3800_v0  ;;  %v2466_v43 = vsel %vm2419_vm2, %v426_v13, 0.0  ;;  %v2470_v44 = vsel %vm2430_vm3, %v491_v16, 0.0  ;;  %vm3788_vm3 = vcmp.ne.f32.partialorder %v2462_v42, 0.0 }
  0xf4   : > { %657 = vadd.xlane.f32.xlu2 %v656_v23  ;;  %v1115_v40 = vadd.f32 %v1083_v33, %v1082_v32  ;;  %v635_v57 = vadd.f32 %v2470_v44, %v2466_v43  ;;  %v2530_v12 = vcvt.s32.f32 %v284_v59  ;;  %v2545_v22 = vcvt.s32.f32 %v269_v1 }
  0xf5   : > { %v450_v31 = vpop.f32.mrf.mxu2  ;;  %v2549_v27 = vcvt.s32.f32 %v270_v7  ;;  %v2551_v28 = vcvt.s32.f32 %v271_v8  ;;  %v274_v1 = vunpack.c.2.s8 %v2483_v50  ;;  %v275_v8 = vunpack.c.2.s8 %v2486_v51 }
  0xf6   : > { %vm554_vm8 = vcmp.ge.f32.partialorder %v450_v31, 0.1  ;;  %v515_v34 = vpop.f32.mrf.mxu3  ;;  %1137 = vadd.xlane.f32.xlu0 %v1136_v29  ;;  %3873 = vst [vmem:[#allocation15_spill] sm:$0xff] %v2545_v22  ;;  %v2554_v29 = vld [vmem:[%s2315_s8 + $0x30] sm:$0xff] }
  0xf7   : > { %vm2445_vm10 = vmand %vm554_vm8, %vm3785_vm4  ;;  %vm555_vm12 = vcmp.ge.f32.partialorder %v515_v34, 0.1  ;;  %v429_v36 = vpop.f32.mrf.mxu0  ;;  %vm3789_vm4 = vcmp.ne.f32.partialorder %v2451_v37, 0.0  ;;  %3874 = vst [vmem:[#allocation16_spill] sm:$0xff] %v2551_v28  ;;  %vm3809_vm11 = vcmp.ne.f32.partialorder %v2551_v28, 0.0 }
  0xf8   : > { %vm2455_vm15 = vmand %vm555_vm12, %vm3784_vm5  ;;  %vm540_vm8 = vcmp.ge.f32.partialorder %v429_v36, 0.1  ;;  %v494_v39 = vpop.f32.mrf.mxu1  ;;  %v1098_v41 = vsel %vm2445_vm10, 1.0, %v3800_v0  ;;  %v2536_v15 = vsel %vm2445_vm10, %v450_v31, 0.0  ;;  %vm3794_vm10 = vcmp.ne.f32.partialorder %v2530_v12, 0.0  ;;  %v2560_v31 = vld [vmem:[%s2315_s8 + $0x38] sm:$0xff] }
  0xf9   : > { %vm541_vm12 = vcmp.ge.f32.partialorder %v494_v39, 0.1  ;;  %v1099_v45 = vsel %vm2455_vm15, 1.0, %v3800_v0  ;;  %vm2477_vm5 = vmand %vm540_vm8, %vm3787_vm13  ;;  %v2540_v16 = vsel %vm2455_vm15, %v515_v34, 0.0  ;;  %vm3795_vm15 = vcmp.ne.f32.partialorder %v2545_v22, 0.0 }
  0xfa   : > { %v1139_v46 = vadd.f32 %v1099_v45, %v1098_v41  ;;  %vm2490_vm2 = vmand %vm541_vm12, %vm3786_vm14  ;;  %v2505_v9 = vsel %vm2477_vm5, %v429_v36, 0.0  ;;  %v659_v30 = vadd.f32 %v2540_v16, %v2536_v15  ;;  %v286_v34 = vunpack.c.0.s8 %v2554_v29 }
  0xfb   : > { %v2509_v48 = vsel %vm2490_vm2, %v494_v39, 0.0  ;;  %v1085_v60 = vsel %vm2490_vm2, 1.0, %v3800_v0  ;;  %v291_v56 = vunpack.c.2.s8 %v2560_v31 }
  0xfc   : > { %1116 = vadd.xlane.f32.xlu2 %v1115_v40  ;;  %1140 = vadd.xlane.f32.xlu1 %v1139_v46  ;;  %v638_v24 = vadd.f32 %v2509_v48, %v2505_v9  ;;  %v287_v40 = vunpack.c.0.s8 %v2560_v31 }
  0xfd   : > { %v453_v62 = vpop.f32.mrf.mxu2 }
  0xfe   : > { %vm556_vm8 = vcmp.ge.f32.partialorder %v453_v62, 0.1  ;;  %v518_v4 = vpop.f32.mrf.mxu3  ;;  %636 = vadd.xlane.f32.xlu0 %v635_v57  ;;  %v1084_v57 = vsel %vm2477_vm5, 1.0, %v3800_v0  ;;  %v2630_v7 = vcvt.s32.f32 %v287_v40 }
  0xff   : > { %vm2513_vm12 = vmand %vm556_vm8, %vm3789_vm4  ;;  %vm557_vm14 = vcmp.ge.f32.partialorder %v518_v4, 0.1  ;;  %v2517_v49 = vpop.f32.mrf.mxu0  ;;  %vm3823_vm8 = vcmp.ne.f32.partialorder %v2532_v14, 0.0  ;;  %vm3810_vm4 = vcmp.ne.f32.partialorder %v2549_v27, 0.0  ;;  %v1118_v52 = vadd.f32 %v1085_v60, %v1084_v57 }
 0x100   : > { %vm2521_vm13 = vmand %vm557_vm14, %vm3788_vm3  ;;  %v1100_v10 = vsel %vm2513_vm12, 1.0, %v3800_v0  ;;  %v497_v13 = vpop.f32.mrf.mxu1  ;;  %vm3796_vm14 = vcmp.ne.f32.partialorder %v2528_v11, 0.0  ;;  %v2570_v35 = vsel %vm2513_vm12, %v453_v62, 0.0  ;;  %vm542_vm6 = vcmp.ge.f32.partialorder %v2517_v49, 0.1  ;;  %3886 = vst [vmem:[#allocation18_spill] sm:$0xff] %v2630_v7 }
 0x101   : > { %v1101_v21 = vsel %vm2521_vm13, 1.0, %v3800_v0  ;;  %v2574_v36 = vsel %vm2521_vm13, %v518_v4, 0.0  ;;  %vm543_vm12 = vcmp.ge.f32.partialorder %v497_v13, 0.1  ;;  %v2620_v4 = vcvt.s32.f32 %v286_v34 }
 0x102   : > { %v1142_v23 = vadd.f32 %v1101_v21, %v1100_v10  ;;  %v662_v62 = vadd.f32 %v2574_v36, %v2570_v35  ;;  %vm2634_vm2 = vmand %vm543_vm12, %vm3795_vm15  ;;  %vm3807_vm12 = vcmp.ne.f32.partialorder %v2630_v7, 0.0  ;;  %v289_v60 = vunpack.c.1.s8 %v2560_v31 }
 0x103   : > { %3883 = vst [vmem:[#allocation17_spill] sm:$0xff] %v2620_v4  ;;  %v1087_v59 = vsel %vm2634_vm2, 1.0, %v3800_v0 }
 0x104   : > { %1143 = vadd.xlane.f32.xlu2 %v1142_v23  ;;  %639 = vadd.xlane.f32.xlu1 %v638_v24  ;;  %v273_v24 = vunpack.c.1.s8 %v2486_v51  ;;  %v2700_v7 = vcvt.s32.f32 %v289_v60 }
 0x105   : > { %v456_v32 = vpop.f32.mrf.mxu2 }
 0x106   : > { %vm558_vm3 = vcmp.ge.f32.partialorder %v456_v32, 0.1  ;;  %v521_v33 = vpop.f32.mrf.mxu3  ;;  %660 = vadd.xlane.f32.xlu0 %v659_v30  ;;  %3896 = vst [vmem:[#allocation22_spill] sm:$0xff] %v2700_v7 }
 0x107   : > { %vm2578_vm9 = vmand %vm558_vm3, %vm3794_vm10  ;;  %vm559_vm7 = vcmp.ge.f32.partialorder %v521_v33, 0.1  ;;  %v435_v39 = vpop.f32.mrf.mxu0 }
 0x108   : > { %v2586_v41 = vsel %vm2578_vm9, %v456_v32, 0.0  ;;  %vm2590_vm13 = vmand %vm559_vm7, %vm3823_vm8  ;;  %vm544_vm3 = vcmp.ge.f32.partialorder %v435_v39, 0.1  ;;  %v500_v46 = vpop.f32.mrf.mxu1 }
 0x109   : > { %v2599_v58 = vsel %vm2590_vm13, %v521_v33, 0.0  ;;  %vm2603_vm10 = vmand %vm544_vm3, %vm3810_vm4  ;;  %vm545_vm7 = vcmp.ge.f32.partialorder %v500_v46, 0.1  ;;  %v2656_v33 = vsel %vm2634_vm2, %v497_v13, 0.0  ;;  %v1103_v13 = vsel %vm2590_vm13, 1.0, %v3800_v0 }
 0x10a   : > { %v665_v47 = vadd.f32 %v2599_v58, %v2586_v41  ;;  %vm2616_vm5 = vmand %vm545_vm7, %vm3809_vm11  ;;  %v2641_v10 = vsel %vm2603_vm10, %v435_v39, 0.0  ;;  %v288_v39 = vunpack.c.1.s8 %v2554_v29 }
 0x10b   : > { %vm2626_vm3 = vmand %vm542_vm6, %vm3796_vm14  ;;  %v2645_v21 = vsel %vm2616_vm5, %v500_v46, 0.0  ;;  %vm3808_vm6 = vcmp.ne.f32.partialorder %v2620_v4, 0.0  ;;  %v2662_v46 = vcvt.s32.f32 %v272_v54  ;;  %v1088_v4 = vsel %vm2603_vm10, 1.0, %v3800_v0 }
 0x10c   : > { %666 = vadd.xlane.f32.xlu2 %v665_v47  ;;  %663 = vadd.xlane.f32.xlu1 %v662_v62  ;;  %v2652_v32 = vsel %vm2626_vm3, %v2517_v49, 0.0  ;;  %v644_v40 = vadd.f32 %v2645_v21, %v2641_v10  ;;  %v1102_v49 = vsel %vm2578_vm9, 1.0, %v3800_v0  ;;  %v2671_v47 = vcvt.s32.f32 %v273_v24 }
 0x10d   : > { %v459_v23 = vpop.f32.mrf.mxu2  ;;  %3889 = vst [vmem:[#allocation19_spill] sm:$0xff] %v2662_v46  ;;  %v641_v62 = vadd.f32 %v2656_v33, %v2652_v32  ;;  %v1145_v45 = vadd.f32 %v1103_v13, %v1102_v49  ;;  %vm3804_vm13 = vcmp.ne.f32.partialorder %v2662_v46, 0.0  ;;  %v2688_v54 = vcvt.s32.f32 %v288_v39 }
 0x10e   : > { %1119 = vadd.xlane.f32.xlu0 %v1118_v52  ;;  %v524_v30 = vpop.f32.mrf.mxu3  ;;  %vm560_vm7 = vcmp.ge.f32.partialorder %v459_v23, 0.1  ;;  %3890 = vst [vmem:[#allocation20_spill] sm:$0xff] %v2671_v47  ;;  %v290_v24 = vunpack.c.2.s8 %v2554_v29  ;;  %v1086_v39 = vsel %vm2626_vm3, 1.0, %v3800_v0  ;;  %v2741_v46 = vcvt.s32.f32 %v291_v56 }
 0x10f   : > { %v438_v34 = vpop.f32.mrf.mxu0  ;;  %vm561_vm15 = vcmp.ge.f32.partialorder %v524_v30, 0.1  ;;  %vm2677_vm14 = vmand %vm560_vm7, %vm3808_vm6  ;;  %3895 = vst [vmem:[#allocation21_spill] sm:$0xff] %v2688_v54  ;;  %v1121_v11 = vadd.f32 %v1087_v59, %v1086_v39  ;;  %vm3813_vm7 = vcmp.ne.f32.partialorder %v2688_v54, 0.0  ;;  %v3906_v39 = vmov 0.0  }
 0x110   : > { %v503_v57 = vpop.f32.mrf.mxu1  ;;  %vm2683_vm9 = vmand %vm561_vm15, %vm3807_vm12  ;;  %vm3806_vm15 = vcmp.ne.f32.partialorder %v2671_v47, 0.0  ;;  %vm546_vm10 = vcmp.ge.f32.partialorder %v438_v34, 0.1  ;;  %v2713_v13 = vsel %vm2677_vm14, %v459_v23, 0.0  ;;  %v2720_v22 = vcvt.s32.f32 %v290_v24  ;;  %3905 = vst [vmem:[#allocation27_spill] sm:$0xff] %v2741_v46 }
 0x111   : > { %3897 = vst [vmem:[#allocation23_spill] sm:$0xff] %v2713_v13  ;;  %v2717_v60 = vsel %vm2683_vm9, %v524_v30, 0.0  ;;  %vm2725_vm3 = vmand %vm546_vm10, %vm3804_vm13  ;;  %v2737_v24 = vcvt.s32.f32 %v274_v1  ;;  %vm3820_vm10 = vcmp.ne.f32.partialorder %v2700_v7, 0.0  ;;  %v1104_v59 = vsel %vm2677_vm14, 1.0, %v3906_v39 }
 0x112   : > { %3898 = vst [vmem:[#allocation24_spill] sm:$0xff] %v2717_v60  ;;  %v2748_v47 = vcvt.s32.f32 %v275_v8  ;;  %v2752_v1 = vsel %vm2725_vm3, %v438_v34, 0.0  ;;  %v276_v8 = vunpack.c.3.s8 %v2483_v50  ;;  %v277_v34 = vunpack.c.3.s8 %v2486_v51 }
 0x113   : > { %3899 = vst [vmem:[#allocation25_spill] sm:$0xff] %v2720_v22  ;;  %vm3822_vm14 = vcmp.ne.f32.partialorder %v2737_v24, 0.0  ;;  %v1090_v38 = vsel %vm2725_vm3, 1.0, %v3906_v39  ;;  %v293_v30 = vunpack.c.3.s8 %v2560_v31 }
 0x114   : > { %645 = vadd.xlane.f32.xlu2 %v644_v40  ;;  %642 = vadd.xlane.f32.xlu1 %v641_v62  ;;  %v1089_v40 = vsel %vm2616_vm5, 1.0, %v3800_v0  ;;  %vm547_vm5 = vcmp.ge.f32.partialorder %v503_v57, 0.1  ;;  %3904 = vst [vmem:[#allocation26_spill] sm:$0xff] %v2737_v24 }
 0x115   : > { %v2697_v62 = vpop.f32.mrf.mxu2  ;;  %vm2731_vm2 = vmand %vm547_vm5, %vm3806_vm15  ;;  %vm3819_vm5 = vcmp.ne.f32.partialorder %v2720_v22, 0.0  ;;  %3907 = vst [vmem:[#allocation28_spill] sm:$0xff] %v2748_v47 }
 0x116   : > { %1146 = vadd.xlane.f32.xlu0 %v1145_v45  ;;  %v2708_v49 = vpop.f32.mrf.mxu3  ;;  %v1124_v45 = vadd.f32 %v1089_v40, %v1088_v4  ;;  %v668_v4 = vadd.f32 %v2717_v60, %v2713_v13  ;;  %vm562_vm13 = vcmp.ge.f32.partialorder %v2697_v62, 0.1  ;;  %3908 = vst [vmem:[#allocation29_spill] sm:$0xff] %v2752_v1  ;;  %v2756_v56 = vsel %vm2731_vm2, %v503_v57, 0.0 }
 0x117   : > { %v441_v23 = vpop.f32.mrf.mxu0  ;;  %3909 = vst [vmem:[#allocation30_spill] sm:$0xff] %v2756_v56  ;;  %vm563_vm15 = vcmp.ge.f32.partialorder %v2708_v49, 0.1  ;;  %vm2769_vm6 = vmand %vm562_vm13, %vm3813_vm7  ;;  %v1091_v50 = vsel %vm2731_vm2, 1.0, %v3906_v39  ;;  %v292_v60 = vunpack.c.3.s8 %v2554_v29  ;;  %vm3821_vm2 = vcmp.ne.f32.partialorder %v2748_v47, 0.0 }
 0x118   : > { %v506_v40 = vpop.f32.mrf.mxu1  ;;  %vm2782_vm4 = vmand %vm563_vm15, %vm3820_vm10  ;;  %vm548_vm13 = vcmp.ge.f32.partialorder %v441_v23, 0.1  ;;  %v2805_v29 = vcvt.s32.f32 %v277_v34  ;;  %v1106_v31 = vsel %vm2769_vm6, 1.0, %v3906_v39 }
 0x119   : > { %vm549_vm7 = vcmp.ge.f32.partialorder %v506_v40, 0.1 }
 0x11a   : > { %3919 = vst [vmem:[#allocation32_spill] sm:$0xff] %v2805_v29 }
 0x11c   : > { %1125 = vadd.xlane.f32.xlu2 %v1124_v45  ;;  %1122 = vadd.xlane.f32.xlu1 %v1121_v11  ;;  %v1105_v11 = vsel %vm2683_vm9, 1.0, %v3906_v39  ;;  %vm3818_vm9 = vcmp.ne.f32.partialorder %v2741_v46, 0.0 }
 0x11d   : > { %v465_v52 = vpop.f32.mrf.mxu2  ;;  %v1148_v54 = vadd.f32 %v1105_v11, %v1104_v59  ;;  %v1127_v59 = vadd.f32 %v1091_v50, %v1090_v38  ;;  %v2803_v11 = vcvt.s32.f32 %v276_v8  ;;  %v2819_v8 = vcvt.s32.f32 %v292_v60 }
 0x11e   : > { %669 = vadd.xlane.f32.xlu0 %v668_v4  ;;  %vm564_vm12 = vcmp.ge.f32.partialorder %v465_v52, 0.1  ;;  %v530_v45 = vpop.f32.mrf.mxu3  ;;  %v647_v4 = vadd.f32 %v2756_v56, %v2752_v1 }
 0x11f   : > { %vm565_vm11 = vcmp.ge.f32.partialorder %v530_v45, 0.1  ;;  %vm2791_vm3 = vmand %vm564_vm12, %vm3819_vm5  ;;  %3918 = vst [vmem:[#allocation31_spill] sm:$0xff] %v2803_v11  ;;  %v444_v56 = vpop.f32.mrf.mxu0  ;;  %vm356_vm10 = vcmp.ne.f32.partialorder %v2819_v8, 0.0 }
 0x120   : > { %vm2799_vm15 = vmand %vm565_vm11, %vm3818_vm9  ;;  %v509_v38 = vpop.f32.mrf.mxu1  ;;  %3924 = vst [vmem:[#allocation33_spill] sm:$0xff] %v2819_v8  ;;  %v2823_v34 = vsel %vm2791_vm3, %v465_v52, 0.0  ;;  %vm341_vm9 = vcmp.ne.f32.partialorder %v2805_v29, 0.0  ;;  %v2841_v52 = vsel %vm2782_vm4, %v2708_v49, 0.0  ;;  %v1448_v49 = vlaneseq }
 0x121   : > { %vm2809_vm12 = vmand %vm548_vm13, %vm3822_vm14  ;;  %3925 = vst [vmem:[#allocation34_spill] sm:$0xff] %v2823_v34  ;;  %v2827_v50 = vsel %vm2799_vm15, %v530_v45, 0.0  ;;  %vm550_vm13 = vcmp.ge.f32.partialorder %v444_v56, 0.1  ;;  %vm551_vm5 = vcmp.ge.f32.partialorder %v509_v38, 0.1 }
 0x122   : > { %vm2815_vm11 = vmand %vm549_vm7, %vm3821_vm2  ;;  %3926 = vst [vmem:[#allocation35_spill] sm:$0xff] %v2827_v50  ;;  %vm3827_vm7 = vcmp.ne.f32.partialorder %v2803_v11, 0.0  ;;  %v2845_v45 = vsel %vm2809_vm12, %v441_v23, 0.0  ;;  %v1092_v24 = vsel %vm2809_vm12, 1.0, %v3906_v39  ;;  %v2936_v11 = vand.u32 127, %v1448_v49 }
 0x123   : > { %3929 = vst [vmem:[#allocation38_spill] sm:$0xff] %v2841_v52  ;;  %vm2856_vm14 = vmand %vm550_vm13, %vm3827_vm7 }
 0x124   : > { %648 = vadd.xlane.f32.xlu2 %v647_v4  ;;  %1149 = vadd.xlane.f32.xlu1 %v1148_v54  ;;  %v2829_v4 = vcvt.s32.f32 %v293_v30  ;;  %v2834_v54 = vsel %vm2769_vm6, %v2697_v62, 0.0  ;;  %3930 = vst [vmem:[#allocation39_spill] sm:$0xff] %v2845_v45  ;;  %v2849_v62 = vsel %vm2815_vm11, %v506_v40, 0.0  ;;  %v674_v30 = vadd.f32 %v2827_v50, %v2823_v34  ;;  %vm2865_vm0 = vmand %vm551_vm5, %vm341_vm9 }
 0x125   : > { %v468_v46 = vpop.f32.mrf.mxu2  ;;  %3928 = vst [vmem:[#allocation37_spill] sm:$0xff] %v2834_v54  ;;  %v671_v23 = vadd.f32 %v2841_v52, %v2834_v54  ;;  %v1094_v29 = vsel %vm2856_vm14, 1.0, %v3906_v39  ;;  %v1095_v8 = vsel %vm2865_vm0, 1.0, %v3906_v39  ;;  %v2907_v22 = vsel %vm2856_vm14, %v444_v56, 0.0 }
 0x126   : > { %3927 = vst [vmem:[#allocation36_spill] sm:$0xff] %v2829_v4  ;;  %1128 = vadd.xlane.f32.xlu0 %v1127_v59  ;;  %v533_v60 = vpop.f32.mrf.mxu3  ;;  %vm566_vm2 = vcmp.ge.f32.partialorder %v468_v46, 0.1  ;;  %vm3846_vm8 = vcmp.ne.f32.partialorder %v2829_v4, 0.0  ;;  %v650_v59 = vadd.f32 %v2849_v62, %v2845_v45  ;;  %v1133_v52 = vadd.f32 %v1095_v8, %v1094_v29 }
 0x127   : > { %3931 = vst [vmem:[#allocation40_spill] sm:$0xff] %v2849_v62  ;;  %vm567_vm1 = vcmp.ge.f32.partialorder %v533_v60, 0.1  ;;  %vm2873_vm13 = vmand %vm566_vm2, %vm356_vm10  ;;  %v1108_v29 = vsel %vm2791_vm3, 1.0, %v3906_v39  ;;  %v1109_v56 = vsel %vm2799_vm15, 1.0, %v3906_v39 }
 0x128   : > { %vm2879_vm7 = vmand %vm567_vm1, %vm3846_vm8  ;;  %3942 = vst [vmem:[#allocation43_spill] sm:$0xff] %v2907_v22  ;;  %v1154_v57 = vadd.f32 %v1109_v56, %v1108_v29  ;;  %v1110_v51 = vsel %vm2873_vm13, 1.0, %v3906_v39 }
 0x129   : > { %v2901_v4 = vsel %vm2879_vm7, %v533_v60, 0.0  ;;  %v1111_v0 = vsel %vm2879_vm7, 1.0, %v3906_v39 }
 0x12a   : > { %3941 = vst [vmem:[#allocation42_spill] sm:$0xff] %v2901_v4 }
 0x12c   : > { %675 = vadd.xlane.f32.xlu2 %v674_v30  ;;  %672 = vadd.xlane.f32.xlu1 %v671_v23  ;;  %v1093_v30 = vsel %vm2815_vm11, 1.0, %v3906_v39  ;;  %v2897_v23 = vsel %vm2873_vm13, %v468_v46, 0.0  ;;  %v2911_v46 = vsel %vm2865_vm0, %v509_v38, 0.0 }
 0x12d   : > { %3940 = vst [vmem:[#allocation41_spill] sm:$0xff] %v2897_v23  ;;  %v1130_v62 = vadd.f32 %v1093_v30, %v1092_v24  ;;  %v677_v50 = vadd.f32 %v2901_v4, %v2897_v23  ;;  %v1107_v24 = vsel %vm2782_vm4, 1.0, %v3906_v39  ;;  %v653_v38 = vadd.f32 %v2911_v46, %v2907_v22 }
 0x12e   : > { %651 = vadd.xlane.f32.xlu0 %v650_v59  ;;  %3943 = vst [vmem:[#allocation44_spill] sm:$0xff] %v2911_v46  ;;  %v1151_v8 = vadd.f32 %v1107_v24, %v1106_v31  ;;  %v2934_v59 = vshrl.u32 %v1448_v49, 7  ;;  %v2938_v30 = vstv %s1719_s18 }
 0x134   : > { %1134 = vadd.xlane.f32.xlu2 %v1133_v52  ;;  %1131 = vadd.xlane.f32.xlu1 %v1130_v62 }
 0x136   : > { %678 = vadd.xlane.f32.xlu0 %v677_v50  ;;  %v1157_v50 = vadd.f32 %v1111_v0, %v1110_v51 }
 0x13c   : > { %1152 = vadd.xlane.f32.xlu2 %v1151_v8  ;;  %654 = vadd.xlane.f32.xlu1 %v653_v38  ;;  %v2944_v8 = vadd.s32 128, %v2936_v11  ;;  %v2948_v38 = vadd.s32 %v2938_v30, %v2934_v59 }
 0x13e   : > { %1155 = vadd.xlane.f32.xlu0 %v1154_v57  ;;  %vm1485_vm13 = vcmp.eq.s32.totalorder %v2936_v11, %v2948_v38 }
 0x144   : > { %1158 = vadd.xlane.f32.xlu1 %v1157_v50 }
 0x161   : > { %v1114_v7 = vpop.xlane.xlu1 %1113  ;;  %v634_v60 = vpop.xlane.xlu0 %633 }
 0x162   : > { %v1160_v52 = vadd.f32 1.0, %v1114_v7  ;;  %vm680_vm0 = vcmp.eq.f32.partialorder %v634_v60, 0.0 }
 0x163   : > { %v696_v62 = vsel %vm680_vm0, 1.0, %v634_v60 }
 0x164   : > { %1832 = vrcp.f32 %v1160_v52  ;;  %v1185_v56 = vand.u32 2147483647, %v1160_v52  ;;  %vm1181_vm4 = vweird.f32 %v1160_v52  ;;  %v1187_v0 = vand.u32 2147483648, %v1160_v52 }
 0x165   : > { %1834 = vrcp.f32 %v696_v62  ;;  %v721_v50 = vand.u32 2147483647, %v696_v62  ;;  %vm717_vm6 = vweird.f32 %v696_v62  ;;  %v723_v49 = vand.u32 2147483648, %v696_v62 }
 0x166   : > { %vm2953_vm14 = vcmp.eq.f32.partialorder %v1185_v56, 8.507059e+37  ;;  %v1188_v34 = vor.u32 1.1754944e-38, %v1187_v0 }
 0x167   : > { %v658_v40 = vpop.xlane.xlu2 %657  ;;  %vm2962_vm2 = vcmp.eq.f32.partialorder %v721_v50, 8.507059e+37  ;;  %v724_v13 = vor.u32 1.1754944e-38, %v723_v49 }
 0x168   : > { %vm688_vm1 = vcmp.eq.f32.partialorder %v658_v40, 0.0 }
 0x169   : > { %v2940_v47 = vsel %vm688_vm1, 1.0, %v658_v40  ;;  %v1138_v31 = vpop.xlane.xlu0 %1137  ;;  %v1457_v40 = vadd.s32 64, %v2934_v59 }
 0x16a   : > { %v1833_v39 = vpop.eup %1832  ;;  %1836 = vrcp.f32 %v2940_v47  ;;  %v2950_v7 = vadd.f32 1.0, %v1138_v31  ;;  %v843_v0 = vand.u32 2147483648, %v2940_v47  ;;  %vm837_vm7 = vweird.f32 %v2940_v47 }
 0x16b   : > { %v1835_v24 = vpop.eup %1834  ;;  %v1177_v29 = vmul.f32 %v1833_v39, %v1160_v52  ;;  %vm1182_vm5 = vweird.f32 %v1833_v39  ;;  %v2969_v28 = vadd.s32 %v2938_v30, %v1457_v40 }
 0x16c   : > { %v713_v57 = vmul.f32 %v1835_v24, %v696_v62  ;;  %1838 = vrcp.f32 %v2950_v7  ;;  %vm718_vm3 = vweird.f32 %v1835_v24  ;;  %vm1183_vm15 = vmor %vm1181_vm4, %vm1182_vm5  ;;  %vm1301_vm1 = vweird.f32 %v2950_v7 }
 0x16d   : > { %v1178_v51 = vsub.f32 1.0, %v1177_v29  ;;  %vm719_vm12 = vmor %vm717_vm6, %vm718_vm3  ;;  %vm1486_vm4 = vcmp.eq.s32.totalorder %v2944_v8, %v2948_v38 }
 0x16e   : > { %v714_v60 = vsub.f32 1.0, %v713_v57 }
 0x16f   : > { %v1179_v46 = vmul.f32 %v1833_v39, %v1178_v51  ;;  %v1117_v4 = vpop.xlane.xlu2 %1116  ;;  %v1141_v23 = vpop.xlane.xlu1 %1140  ;;  %v1307_v51 = vand.u32 2147483648, %v2950_v7 }
 0x170   : > { %v1837_v29 = vpop.eup %1836  ;;  %v715_v45 = vmul.f32 %v1835_v24, %v714_v60  ;;  %v2958_v31 = vadd.f32 1.0, %v1117_v4  ;;  %v2960_v57 = vadd.f32 1.0, %v1141_v23 }
 0x171   : > { %v1180_v54 = vadd.f32 %v1833_v39, %v1179_v46  ;;  %v833_v56 = vmul.f32 %v1837_v29, %v2940_v47  ;;  %v841_v46 = vand.u32 2147483647, %v2940_v47  ;;  %vm838_vm11 = vweird.f32 %v1837_v29 }
 0x172   : > { %v716_v1 = vadd.f32 %v1835_v24, %v715_v45  ;;  %1840 = vrcp.f32 %v2958_v31  ;;  %v1305_v45 = vand.u32 2147483647, %v2950_v7  ;;  %v1839_v60 = vpop.eup %1838  ;;  %vm839_vm6 = vmor %vm837_vm7, %vm838_vm11  ;;  %vm1196_vm3 = vweird.f32 %v2958_v31 }
 0x173   : > { %v1184_v4 = vsel %vm1183_vm15, %v1833_v39, %v1180_v54  ;;  %v834_v23 = vsub.f32 1.0, %v833_v56  ;;  %1842 = vrcp.f32 %v2960_v57  ;;  %vm2987_vm0 = vcmp.eq.f32.partialorder %v841_v46, 8.507059e+37 }
 0x174   : > { %v1189_v50 = vsel %vm2953_vm14, %v1188_v34, %v1184_v4  ;;  %v720_v52 = vsel %vm719_vm12, %v1835_v24, %v716_v1  ;;  %v1297_v34 = vmul.f32 %v1839_v60, %v2950_v7  ;;  %v844_v24 = vor.u32 1.1754944e-38, %v843_v0 }
 0x175   : > { %v1416_v49 = vmul.f32 1.442695, %v1189_v50  ;;  %v725_v54 = vsel %vm2962_vm2, %v724_v13, %v720_v52  ;;  %v835_v62 = vmul.f32 %v1837_v29, %v834_v23  ;;  %vm2997_vm5 = vcmp.eq.f32.partialorder %v1305_v45, 8.507059e+37  ;;  %v637_v52 = vpop.xlane.xlu0 %636 }
 0x176   : > { %v952_v39 = vmul.f32 %v725_v54, %v2382_v2  ;;  %v953_v40 = vmul.f32 %v725_v54, %v2387_v5  ;;  %v1298_v47 = vsub.f32 1.0, %v1297_v34  ;;  %vm1302_vm14 = vweird.f32 %v1839_v60 }
 0x177   : > { %v836_v1 = vadd.f32 %v1837_v29, %v835_v62  ;;  %1844 = vpow2.f32 %v1416_v49  ;;  %v1308_v62 = vor.u32 1.1754944e-38, %v1307_v51  ;;  %vm1303_vm2 = vmor %vm1301_vm1, %vm1302_vm14  ;;  %vm681_vm15 = vcmp.eq.f32.partialorder %v637_v52, 0.0  ;;  %v1144_v7 = vpop.xlane.xlu2 %1143  ;;  %v640_v4 = vpop.xlane.xlu1 %639 }
 0x178   : > { %v2992_v13 = vpop.eup %1840  ;;  %v984_v2 = vmul.f32 1.442695, %v952_v39  ;;  %v986_v5 = vmul.f32 1.442695, %v953_v40  ;;  %v1299_v50 = vmul.f32 %v1839_v60, %v1298_v47  ;;  %v3021_v47 = vsel %vm681_vm15, 1.0, %v637_v52 }
 0x179   : > { %v840_v56 = vsel %vm839_vm6, %v1837_v29, %v836_v1  ;;  %v1192_v23 = vmul.f32 %v2992_v13, %v2958_v31  ;;  %v3003_v46 = vpop.eup %1842  ;;  %vm1197_vm12 = vweird.f32 %v2992_v13  ;;  %vm3952_vm11 = vcmp.ne.f32.partialorder %v2360_v53, 0.0 }
 0x17a   : > { %1846 = vpow2.f32 %v984_v2  ;;  %v845_v0 = vsel %vm2987_vm0, %v844_v24, %v840_v56  ;;  %v1300_v54 = vadd.f32 %v1839_v60, %v1299_v50  ;;  %v1312_v39 = vmul.f32 %v3003_v46, %v2960_v57  ;;  %vm3039_vm6 = vmor %vm1196_vm3, %vm1197_vm12 }
 0x17b   : > { %1848 = vpow2.f32 %v986_v5  ;;  %v968_v29 = vmul.f32 %v845_v0, %v2405_v17  ;;  %v969_v45 = vmul.f32 %v845_v0, %v2411_v20  ;;  %v1193_v49 = vsub.f32 1.0, %v1192_v23 }
 0x17c   : > { %v1304_v17 = vsel %vm1303_vm2, %v1839_v60, %v1300_v54  ;;  %v1200_v20 = vand.u32 2147483647, %v2958_v31  ;;  %v1313_v22 = vsub.f32 1.0, %v1312_v39  ;;  %v1202_v60 = vand.u32 2147483648, %v2958_v31 }
 0x17d   : > { %v1016_v40 = vmul.f32 1.442695, %v968_v29  ;;  %v1018_v34 = vmul.f32 1.442695, %v969_v45  ;;  %v1194_v1 = vmul.f32 %v2992_v13, %v1193_v49  ;;  %v1845_v24 = vpop.eup %1844  ;;  %v1309_v2 = vsel %vm2997_vm5, %v1308_v62, %v1304_v17 }
 0x17e   : > { %v1432_v56 = vmul.f32 1.442695, %v1309_v2  ;;  %v1314_v23 = vmul.f32 %v3003_v46, %v1313_v22  ;;  %vm1316_vm7 = vweird.f32 %v2960_v57  ;;  %vm1317_vm0 = vweird.f32 %v3003_v46 }
 0x17f   : > { %1850 = vpow2.f32 %v1016_v40  ;;  %v1195_v5 = vadd.f32 %v2992_v13, %v1194_v1  ;;  %vm3953_vm1 = vcmp.ne.f32.partialorder %v2365_v55, 0.0  ;;  %v1322_v45 = vand.u32 2147483648, %v2960_v57  ;;  %v661_v1 = vpop.xlane.xlu0 %660 }
 0x180   : > { %v1847_v51 = vpop.eup %1846  ;;  %1852 = vpow2.f32 %v1018_v34  ;;  %v1315_v49 = vadd.f32 %v3003_v46, %v1314_v23  ;;  %v1320_v54 = vand.u32 2147483647, %v2960_v57  ;;  %v1203_v38 = vor.u32 1.1754944e-38, %v1202_v60  ;;  %v667_v23 = vpop.xlane.xlu2 %666 }
 0x181   : > { %v1849_v0 = vpop.eup %1848  ;;  %v1048_v50 = vsel %vm3952_vm11, %v1847_v51, 0.0  ;;  %1854 = vrcp.f32 %v3021_v47  ;;  %v1199_v31 = vsel %vm3039_vm6, %v2992_v13, %v1195_v5  ;;  %v3068_v39 = vadd.f32 1.0, %v1144_v7 }
 0x182   : > { %v1049_v52 = vsel %vm3953_vm1, %v1849_v0, 0.0  ;;  %v1517_v29 = vsel %vm1485_vm13, %v1845_v24, %v1048_v50  ;;  %1856 = vpow2.f32 %v1432_v56  ;;  %vm1501_vm13 = vcmp.eq.s32.totalorder %v2936_v11, %v2969_v28 }
 0x183   : > { %v1518_v55 = vsel %vm1486_vm4, %v1845_v24, %v1049_v52  ;;  %1549 = vst [vmem:[%s3049_s30] sm:$0xff] %v1517_v29  ;;  %vm3064_vm4 = vmor %vm1316_vm7, %vm1317_vm0  ;;  %vm682_vm5 = vcmp.eq.f32.partialorder %v640_v4, 0.0  ;;  %vm1502_vm14 = vcmp.eq.s32.totalorder %v2944_v8, %v2969_v28  ;;  %vm1201_vm3 = vcmp.eq.f32.partialorder %v1200_v20, 8.507059e+37 }
 0x184   : > { %1550 = vst [vmem:[%s3049_s30 + $0x8] sm:$0xff] %v1518_v55  ;;  %v1319_v40 = vsel %vm3064_vm4, %v3003_v46, %v1315_v49  ;;  %v3075_v34 = vsel %vm682_vm5, 1.0, %v640_v4  ;;  %vm3958_vm2 = vcmp.ne.f32.partialorder %v2373_v61, 0.0  ;;  %v1204_v22 = vsel %vm1201_vm3, %v1203_v38, %v1199_v31 }
 0x185   : > { %v1851_v13 = vpop.eup %1850  ;;  %v1323_v24 = vor.u32 1.1754944e-38, %v1322_v45  ;;  %1858 = vrcp.f32 %v3068_v39  ;;  %vm3959_vm15 = vcmp.ne.f32.partialorder %v2377_v63, 0.0  ;;  %vm1321_vm12 = vcmp.eq.f32.partialorder %v1320_v54, 8.507059e+37 }
 0x186   : > { %v1853_v57 = vpop.eup %1852  ;;  %v1064_v17 = vsel %vm3958_vm2, %v1851_v13, 0.0  ;;  %v1450_v46 = vadd.s32 8, %v2934_v59  ;;  %1860 = vrcp.f32 %v3075_v34  ;;  %vm689_vm11 = vcmp.eq.f32.partialorder %v661_v1, 0.0 }
 0x187   : > { %v1855_v2 = vpop.eup %1854  ;;  %v1065_v20 = vsel %vm3959_vm15, %v1853_v57, 0.0  ;;  %v1324_v7 = vsel %vm1321_vm12, %v1323_v24, %v1319_v40  ;;  %v1418_v56 = vmul.f32 1.442695, %v1204_v22  ;;  %v736_v60 = vand.u32 2147483647, %v3021_v47 }
 0x188   : > { %v1857_v5 = vpop.eup %1856  ;;  %v728_v51 = vmul.f32 %v1855_v2, %v3021_v47  ;;  %v738_v50 = vand.u32 2147483648, %v3021_v47  ;;  %v1434_v4 = vmul.f32 1.442695, %v1324_v7  ;;  %v3096_v52 = vadd.s32 %v2938_v30, %v1450_v46 }
 0x189   : > { %v1533_v61 = vsel %vm1501_vm13, %v1857_v5, %v1064_v17  ;;  %v1534_v63 = vsel %vm1502_vm14, %v1857_v5, %v1065_v20  ;;  %vm733_vm7 = vweird.f32 %v1855_v2  ;;  %v3098_v29 = vsel %vm689_vm11, 1.0, %v661_v1 }
 0x18a   : > { %1565 = vst [vmem:[%s3049_s30 + $0x80] sm:$0xff] %v1533_v61  ;;  %v729_v0 = vsub.f32 1.0, %v728_v51  ;;  %v1337_v45 = vand.u32 2147483648, %v3068_v39  ;;  %1862 = vrcp.f32 %v3098_v29  ;;  %vm691_vm0 = vcmp.eq.f32.partialorder %v667_v23, 0.0 }
 0x18b   : > { %1566 = vst [vmem:[%s3049_s30 + $0x88] sm:$0xff] %v1534_v63  ;;  %v3100_v53 = vpop.eup %1858  ;;  %1864 = vpow2.f32 %v1418_v56  ;;  %vm732_vm1 = vweird.f32 %v3021_v47  ;;  %vm3105_vm6 = vcmp.eq.f32.partialorder %v736_v60, 8.507059e+37  ;;  %v739_v38 = vor.u32 1.1754944e-38, %v738_v50 }
 0x18c   : > { %v730_v28 = vmul.f32 %v1855_v2, %v729_v0  ;;  %v1327_v31 = vmul.f32 %v3100_v53, %v3068_v39  ;;  %v1861_v49 = vpop.eup %1860  ;;  %vm1331_vm13 = vweird.f32 %v3068_v39  ;;  %v1458_v62 = vadd.s32 72, %v2934_v59  ;;  %vm734_vm4 = vmor %vm732_vm1, %vm733_vm7  ;;  %v664_v0 = vpop.xlane.xlu1 %663 }
 0x18d   : > { %1866 = vpow2.f32 %v1434_v4  ;;  %v743_v47 = vmul.f32 %v1861_v49, %v3075_v34  ;;  %v3115_v40 = vsel %vm691_vm0, 1.0, %v667_v23  ;;  %v1335_v57 = vand.u32 2147483647, %v3068_v39 }
 0x18e   : > { %v731_v54 = vadd.f32 %v1855_v2, %v730_v28  ;;  %v1328_v13 = vsub.f32 1.0, %v1327_v31  ;;  %v3118_v17 = vor.u32 1.1754944e-38, %v1337_v45  ;;  %1868 = vrcp.f32 %v3115_v40 }
 0x18f   : > { %v744_v24 = vsub.f32 1.0, %v743_v47  ;;  %vm747_vm5 = vweird.f32 %v3075_v34  ;;  %v753_v20 = vand.u32 2147483648, %v3075_v34  ;;  %v751_v51 = vand.u32 2147483647, %v3075_v34 }
 0x190   : > { %v735_v1 = vsel %vm734_vm4, %v1855_v2, %v731_v54  ;;  %v1863_v46 = vpop.eup %1862  ;;  %v1329_v2 = vmul.f32 %v3100_v53, %v1328_v13  ;;  %vm1487_vm14 = vcmp.eq.s32.totalorder %v2936_v11, %v3096_v52  ;;  %vm748_vm3 = vweird.f32 %v1861_v49 }
 0x191   : > { %v740_v22 = vsel %vm3105_vm6, %v739_v38, %v735_v1  ;;  %v1865_v61 = vpop.eup %1864  ;;  %v745_v63 = vmul.f32 %v1861_v49, %v744_v24  ;;  %v3132_v56 = vadd.s32 %v2938_v30, %v1458_v62  ;;  %v848_v60 = vmul.f32 %v1863_v46, %v3098_v29  ;;  %vm749_vm12 = vmor %vm747_vm5, %vm748_vm3 }
 0x192   : > { %v954_v5 = vmul.f32 %v740_v22, %v2466_v43  ;;  %v955_v7 = vmul.f32 %v740_v22, %v2470_v44  ;;  %vm1488_vm2 = vcmp.eq.s32.totalorder %v2944_v8, %v3096_v52  ;;  %vm1332_vm15 = vweird.f32 %v3100_v53  ;;  %v1120_v22 = vpop.xlane.xlu0 %1119 }
 0x193   : > { %v856_v23 = vand.u32 2147483647, %v3098_v29  ;;  %v3139_v50 = vpop.eup %1866  ;;  %v746_v4 = vadd.f32 %v1861_v49, %v745_v63  ;;  %v754_v28 = vor.u32 1.1754944e-38, %v753_v20  ;;  %v849_v45 = vsub.f32 1.0, %v848_v60  ;;  %vm3161_vm5 = vmor %vm1331_vm13, %vm1332_vm15 }
 0x194   : > { %v988_v43 = vmul.f32 1.442695, %v954_v5  ;;  %v990_v44 = vmul.f32 1.442695, %v955_v7  ;;  %v858_v55 = vand.u32 2147483648, %v3098_v29  ;;  %v1869_v31 = vpop.eup %1868  ;;  %v1330_v54 = vadd.f32 %v3100_v53, %v1329_v2 }
 0x195   : > { %vm853_vm11 = vweird.f32 %v1863_v46  ;;  %v886_v38 = vand.u32 2147483647, %v3115_v40  ;;  %vm3147_vm7 = vcmp.eq.f32.partialorder %v1335_v57, 8.507059e+37  ;;  %v750_v13 = vsel %vm749_vm12, %v1861_v49, %v746_v4 }
 0x196   : > { %1870 = vpow2.f32 %v988_v43  ;;  %v850_v47 = vmul.f32 %v1863_v46, %v849_v45  ;;  %vm690_vm0 = vcmp.eq.f32.partialorder %v664_v0, 0.0  ;;  %vm752_vm1 = vcmp.eq.f32.partialorder %v751_v51, 8.507059e+37 }
 0x197   : > { %1872 = vpow2.f32 %v990_v44  ;;  %vm852_vm6 = vweird.f32 %v3098_v29  ;;  %vm3152_vm4 = vcmp.eq.f32.partialorder %v856_v23, 8.507059e+37  ;;  %v878_v34 = vmul.f32 %v1869_v31, %v3115_v40 }
 0x198   : > { %v755_v49 = vsel %vm752_vm1, %v754_v28, %v750_v13  ;;  %v851_v24 = vadd.f32 %v1863_v46, %v850_v47  ;;  %v859_v20 = vor.u32 1.1754944e-38, %v858_v55  ;;  %vm882_vm3 = vweird.f32 %v3115_v40  ;;  %vm854_vm12 = vmor %vm852_vm6, %vm853_vm11 }
 0x199   : > { %v879_v29 = vsub.f32 1.0, %v878_v34  ;;  %vm3167_vm8 = vcmp.eq.f32.partialorder %v886_v38, 8.507059e+37  ;;  %v888_v7 = vand.u32 2147483648, %v3115_v40  ;;  %v3172_v2 = vsel %vm690_vm0, 1.0, %v664_v0  ;;  %v646_v34 = vpop.xlane.xlu2 %645 }
 0x19a   : > { %v1334_v39 = vsel %vm3161_vm5, %v3100_v53, %v1330_v54  ;;  %v855_v51 = vsel %vm854_vm12, %v1863_v46, %v851_v24  ;;  %1874 = vrcp.f32 %v3172_v2  ;;  %v3178_v63 = vadd.f32 1.0, %v1120_v22  ;;  %v643_v22 = vpop.xlane.xlu1 %642 }
 0x19b   : > { %v956_v43 = vmul.f32 %v755_v49, %v2505_v9  ;;  %v860_v44 = vsel %vm3152_vm4, %v859_v20, %v855_v51  ;;  %v880_v23 = vmul.f32 %v1869_v31, %v879_v29  ;;  %vm883_vm13 = vweird.f32 %v1869_v31 }
 0x19c   : > { %v1871_v60 = vpop.eup %1870  ;;  %vm3970_vm15 = vcmp.ne.f32.partialorder %v2384_v3, 0.0  ;;  %v957_v53 = vmul.f32 %v755_v49, %v2509_v48  ;;  %v970_v46 = vmul.f32 %v860_v44, %v2536_v15  ;;  %v971_v28 = vmul.f32 %v860_v44, %v2540_v16  ;;  %vm884_vm0 = vmor %vm882_vm3, %vm883_vm13 }
 0x19d   : > { %v1873_v0 = vpop.eup %1872  ;;  %v1050_v4 = vsel %vm3970_vm15, %v1871_v60, 0.0  ;;  %vm3971_vm11 = vcmp.ne.f32.partialorder %v2389_v6, 0.0  ;;  %v881_v55 = vadd.f32 %v1869_v31, %v880_v23  ;;  %v889_v54 = vor.u32 1.1754944e-38, %v888_v7 }
 0x19e   : > { %v1051_v45 = vsel %vm3971_vm11, %v1873_v0, 0.0  ;;  %v1519_v9 = vsel %vm1487_vm14, %v1865_v61, %v1050_v4  ;;  %v1020_v38 = vmul.f32 1.442695, %v970_v46  ;;  %v1022_v48 = vmul.f32 1.442695, %v971_v28 }
 0x19f   : > { %v1520_v3 = vsel %vm1488_vm2, %v1865_v61, %v1051_v45  ;;  %1551 = vst [vmem:[%s3049_s30 + $0x10] sm:$0xff] %v1519_v9  ;;  %v1459_v15 = vadd.s32 80, %v2934_v59  ;;  %v1339_v6 = vsel %vm3147_vm7, %v3118_v17, %v1334_v39  ;;  %v992_v16 = vmul.f32 1.442695, %v956_v43 }
 0x1a0   : > { %1552 = vst [vmem:[%s3049_s30 + $0x18] sm:$0xff] %v1520_v3  ;;  %v885_v13 = vsel %vm884_vm0, %v1869_v31, %v881_v55  ;;  %1876 = vrcp.f32 %v3178_v63  ;;  %v1875_v47 = vpop.eup %1874  ;;  %v994_v52 = vmul.f32 1.442695, %v957_v53  ;;  %v871_v40 = vand.u32 2147483647, %v3172_v2 }
 0x1a1   : > { %1878 = vpow2.f32 %v1020_v38  ;;  %v890_v61 = vsel %vm3167_vm8, %v889_v54, %v885_v13  ;;  %vm1503_vm14 = vcmp.eq.s32.totalorder %v2936_v11, %v3132_v56  ;;  %v863_v1 = vmul.f32 %v1875_v47, %v3172_v2 }
 0x1a2   : > { %1880 = vpow2.f32 %v1022_v48  ;;  %v1436_v62 = vmul.f32 1.442695, %v1339_v6  ;;  %vm1504_vm2 = vcmp.eq.s32.totalorder %v2944_v8, %v3132_v56  ;;  %v974_v17 = vmul.f32 %v890_v61, %v2586_v41 }
 0x1a3   : > { %v873_v31 = vand.u32 2147483648, %v3172_v2  ;;  %1882 = vpow2.f32 %v992_v16  ;;  %v3216_v57 = vadd.s32 %v2938_v30, %v1459_v15  ;;  %v864_v49 = vsub.f32 1.0, %v863_v1 }
 0x1a4   : > { %vm867_vm8 = vweird.f32 %v3172_v2  ;;  %1884 = vpow2.f32 %v994_v52  ;;  %v975_v24 = vmul.f32 %v890_v61, %v2599_v58  ;;  %vm3220_vm7 = vcmp.eq.f32.partialorder %v871_v40, 8.507059e+37 }
 0x1a5   : > { %v1451_v41 = vadd.s32 16, %v2934_v59  ;;  %v865_v5 = vmul.f32 %v1875_v47, %v864_v49  ;;  %vm868_vm1 = vweird.f32 %v1875_v47  ;;  %vm684_vm6 = vcmp.eq.f32.partialorder %v646_v34, 0.0 }
 0x1a6   : > { %v1877_v29 = vpop.eup %1876  ;;  %vm683_vm4 = vcmp.eq.f32.partialorder %v643_v22, 0.0  ;;  %v1028_v39 = vmul.f32 1.442695, %v974_v17  ;;  %v874_v51 = vor.u32 1.1754944e-38, %v873_v31  ;;  %v1215_v43 = vand.u32 2147483647, %v3178_v63  ;;  %vm869_vm12 = vmor %vm867_vm8, %vm868_vm1 }
 0x1a7   : > { %v1879_v7 = vpop.eup %1878  ;;  %v1207_v60 = vmul.f32 %v1877_v29, %v3178_v63  ;;  %vm3974_vm5 = vcmp.ne.f32.partialorder %v2407_v18, 0.0  ;;  %v866_v23 = vadd.f32 %v1875_v47, %v865_v5  ;;  %v3229_v0 = vsel %vm684_vm6, 1.0, %v646_v34 }
 0x1a8   : > { %v1881_v58 = vpop.eup %1880  ;;  %v1066_v44 = vsel %vm3974_vm5, %v1879_v7, 0.0  ;;  %v3231_v4 = vsel %vm683_vm4, 1.0, %v643_v22  ;;  %vm3975_vm3 = vcmp.ne.f32.partialorder %v2409_v19, 0.0  ;;  %1886 = vrcp.f32 %v3229_v0 }
 0x1a9   : > { %v1067_v53 = vsel %vm3975_vm3, %v1881_v58, 0.0  ;;  %v1535_v46 = vsel %vm1503_vm14, %v3139_v50, %v1066_v44  ;;  %v1208_v18 = vsub.f32 1.0, %v1207_v60  ;;  %v1883_v28 = vpop.eup %1882  ;;  %v1030_v19 = vmul.f32 1.442695, %v975_v24  ;;  %v1126_v24 = vpop.xlane.xlu2 %1125 }
 0x1aa   : > { %v1536_v45 = vsel %vm1504_vm2, %v3139_v50, %v1067_v53  ;;  %1567 = vst [vmem:[%s3049_s30 + $0x90] sm:$0xff] %v1535_v46  ;;  %v870_v9 = vsel %vm869_vm12, %v1875_v47, %v866_v23  ;;  %v1217_v55 = vand.u32 2147483648, %v3178_v63  ;;  %v1885_v54 = vpop.eup %1884  ;;  %vm1212_vm13 = vweird.f32 %v1877_v29  ;;  %v1147_v50 = vpop.xlane.xlu0 %1146 }
 0x1ab   : > { %1568 = vst [vmem:[%s3049_s30 + $0x98] sm:$0xff] %v1536_v45  ;;  %v875_v2 = vsel %vm3220_vm7, %v874_v51, %v870_v9  ;;  %v1209_v3 = vmul.f32 %v1877_v29, %v1208_v18  ;;  %1888 = vrcp.f32 %v3231_v4  ;;  %vm1505_vm15 = vcmp.eq.s32.totalorder %v2936_v11, %v3216_v57 }
 0x1ac   : > { %1890 = vpow2.f32 %v1028_v39  ;;  %v972_v38 = vmul.f32 %v875_v2, %v2570_v35  ;;  %v973_v56 = vmul.f32 %v875_v2, %v2574_v36  ;;  %vm1211_vm11 = vweird.f32 %v3178_v63 }
 0x1ad   : > { %1892 = vpow2.f32 %v1436_v62  ;;  %v1210_v48 = vadd.f32 %v1877_v29, %v1209_v3  ;;  %vm1506_vm0 = vcmp.eq.s32.totalorder %v2944_v8, %v3216_v57  ;;  %v3261_v16 = vadd.s32 %v2938_v30, %v1451_v41  ;;  %vm1213_vm14 = vmor %vm1211_vm11, %vm1212_vm13 }
 0x1ae   : > { %v1024_v15 = vmul.f32 1.442695, %v972_v38  ;;  %v1026_v6 = vmul.f32 1.442695, %v973_v56  ;;  %v1218_v35 = vor.u32 1.1754944e-38, %v1217_v55  ;;  %v1887_v13 = vpop.eup %1886  ;;  %1894 = vpow2.f32 %v1030_v19 }
 0x1af   : > { %v1214_v36 = vsel %vm1213_vm14, %v1877_v29, %v1210_v48  ;;  %vm1216_vm2 = vcmp.eq.f32.partialorder %v1215_v43, 8.507059e+37  ;;  %v3263_v47 = vadd.f32 1.0, %v1147_v50  ;;  %v773_v63 = vmul.f32 %v1887_v13, %v3229_v0 }
 0x1b0   : > { %1896 = vpow2.f32 %v1024_v15  ;;  %v1219_v52 = vsel %vm1216_vm2, %v1218_v35, %v1214_v36  ;;  %v781_v61 = vand.u32 2147483647, %v3229_v0  ;;  %vm3976_vm8 = vcmp.ne.f32.partialorder %v2423_v25, 0.0 }
 0x1b1   : > { %v1889_v40 = vpop.eup %1888  ;;  %v1052_v1 = vsel %vm3976_vm8, %v1883_v28, 0.0  ;;  %vm3977_vm7 = vcmp.ne.f32.partialorder %v2425_v26, 0.0  ;;  %1898 = vpow2.f32 %v1026_v6  ;;  %v1420_v17 = vmul.f32 1.442695, %v1219_v52 }
 0x1b2   : > { %v1053_v62 = vsel %vm3977_vm7, %v1885_v54, 0.0  ;;  %v1891_v31 = vpop.eup %1890  ;;  %v774_v34 = vsub.f32 1.0, %v773_v63  ;;  %v783_v22 = vand.u32 2147483648, %v3229_v0  ;;  %v758_v49 = vmul.f32 %v1889_v40, %v3231_v4  ;;  %v1123_v54 = vpop.xlane.xlu1 %1122 }
 0x1b3   : > { %1900 = vrcp.f32 %v3263_v47  ;;  %v1893_v20 = vpop.eup %1892  ;;  %vm1489_vm1 = vcmp.eq.s32.totalorder %v2936_v11, %v3261_v16  ;;  %vm1490_vm6 = vcmp.eq.s32.totalorder %v2944_v8, %v3261_v16  ;;  %vm777_vm4 = vweird.f32 %v3229_v0 }
 0x1b4   : > { %1902 = vpow2.f32 %v1420_v17  ;;  %v775_v25 = vmul.f32 %v1887_v13, %v774_v34  ;;  %vm778_vm5 = vweird.f32 %v1887_v13  ;;  %vm3279_vm3 = vcmp.eq.f32.partialorder %v781_v61, 8.507059e+37  ;;  %v3283_v29 = vpop.eup %1894  ;;  %v670_v34 = vpop.xlane.xlu0 %669 }
 0x1b5   : > { %v759_v41 = vsub.f32 1.0, %v758_v49  ;;  %vm3980_vm12 = vcmp.ne.f32.partialorder %v2530_v12, 0.0  ;;  %vm762_vm13 = vweird.f32 %v3231_v4  ;;  %v768_v7 = vand.u32 2147483648, %v3231_v4  ;;  %vm779_vm14 = vmor %vm777_vm4, %vm778_vm5 }
 0x1b6   : > { %v3287_v5 = vsel %vm3980_vm12, %v1891_v31, 0.0  ;;  %v3291_v39 = vadd.f32 1.0, %v1126_v24  ;;  %v1897_v51 = vpop.eup %1896  ;;  %v776_v60 = vadd.f32 %v1887_v13, %v775_v25  ;;  %v784_v43 = vor.u32 1.1754944e-38, %v783_v22  ;;  %v649_v24 = vpop.xlane.xlu2 %648 }
 0x1b7   : > { %v760_v58 = vmul.f32 %v1889_v40, %v759_v41  ;;  %v766_v44 = vand.u32 2147483647, %v3231_v4  ;;  %v1899_v23 = vpop.eup %1898  ;;  %vm3981_vm11 = vcmp.ne.f32.partialorder %v2451_v37, 0.0  ;;  %vm763_vm2 = vweird.f32 %v1889_v40 }
 0x1b8   : > { %v1068_v53 = vsel %vm3981_vm11, %v1897_v51, 0.0  ;;  %v1460_v12 = vadd.s32 88, %v2934_v59  ;;  %1904 = vrcp.f32 %v3291_v39  ;;  %vm3982_vm8 = vcmp.ne.f32.partialorder %v2462_v42, 0.0 }
 0x1b9   : > { %v1901_v46 = vpop.eup %1900  ;;  %v1069_v18 = vsel %vm3982_vm8, %v1899_v23, 0.0  ;;  %v1537_v28 = vsel %vm1505_vm15, %v1893_v20, %v1068_v53  ;;  %v780_v37 = vsel %vm779_vm14, %v1887_v13, %v776_v60  ;;  %v761_v45 = vadd.f32 %v1889_v40, %v760_v58  ;;  %vm764_vm15 = vmor %vm762_vm13, %vm763_vm2 }
 0x1ba   : > { %v1903_v19 = vpop.eup %1902  ;;  %v1538_v0 = vsel %vm1506_vm0, %v1893_v20, %v1069_v18  ;;  %1569 = vst [vmem:[%s3049_s30 + $0xa0] sm:$0xff] %v1537_v28  ;;  %v785_v9 = vsel %vm3279_vm3, %v784_v43, %v780_v37  ;;  %v769_v55 = vor.u32 1.1754944e-38, %v768_v7  ;;  %v1342_v42 = vmul.f32 %v1901_v46, %v3263_v47  ;;  %v1150_v37 = vpop.xlane.xlu1 %1149 }
 0x1bb   : > { %1570 = vst [vmem:[%s3049_s30 + $0xa8] sm:$0xff] %v1538_v0  ;;  %v1521_v2 = vsel %vm1489_vm1, %v1903_v19, %v1052_v1  ;;  %v1522_v3 = vsel %vm1490_vm6, %v1903_v19, %v1053_v62  ;;  %v960_v57 = vmul.f32 %v785_v9, %v2641_v10  ;;  %v961_v38 = vmul.f32 %v785_v9, %v2645_v21 }
 0x1bc   : > { %1553 = vst [vmem:[%s3049_s30 + $0x20] sm:$0xff] %v1521_v2  ;;  %v765_v56 = vsel %vm764_vm15, %v1889_v40, %v761_v45  ;;  %vm767_vm0 = vcmp.eq.f32.partialorder %v766_v44, 8.507059e+37  ;;  %v1343_v50 = vsub.f32 1.0, %v1342_v42  ;;  %v1350_v48 = vand.u32 2147483647, %v3263_v47 }
 0x1bd   : > { %1554 = vst [vmem:[%s3049_s30 + $0x28] sm:$0xff] %v1522_v3  ;;  %v770_v15 = vsel %vm767_vm0, %v769_v55, %v765_v56  ;;  %vm1347_vm7 = vweird.f32 %v1901_v46  ;;  %v1352_v6 = vand.u32 2147483648, %v3263_v47  ;;  %v3329_v16 = vadd.f32 1.0, %v1123_v54 }
 0x1be   : > { %v1905_v10 = vpop.eup %1904  ;;  %v1000_v35 = vmul.f32 1.442695, %v960_v57  ;;  %v958_v21 = vmul.f32 %v770_v15, %v2652_v32  ;;  %v959_v4 = vmul.f32 %v770_v15, %v2656_v33  ;;  %v1344_v13 = vmul.f32 %v1901_v46, %v1343_v50  ;;  %v3987_v50 = vld [vmem:[#allocation16_spill] sm:$0xff] }
 0x1bf   : > { %v1002_v36 = vmul.f32 1.442695, %v961_v38  ;;  %v3334_v52 = vadd.s32 %v2938_v30, %v1460_v12  ;;  %vm1346_vm1 = vweird.f32 %v3263_v47  ;;  %v1237_v63 = vmul.f32 %v1905_v10, %v3291_v39 }
 0x1c0   : > { %v996_v61 = vmul.f32 1.442695, %v958_v21  ;;  %v1345_v40 = vadd.f32 %v1901_v46, %v1344_v13  ;;  %vm1351_vm6 = vcmp.eq.f32.partialorder %v1350_v48, 8.507059e+37  ;;  %v1453_v1 = vadd.s32 32, %v2934_v59  ;;  %vm1348_vm4 = vmor %vm1346_vm1, %vm1347_vm7 }
 0x1c1   : > { %v998_v62 = vmul.f32 1.442695, %v959_v4  ;;  %v1353_v32 = vor.u32 1.1754944e-38, %v1352_v6  ;;  %v1238_v17 = vsub.f32 1.0, %v1237_v63  ;;  %1906 = vrcp.f32 %v3329_v16  ;;  %v3991_v4 = vld [vmem:[#allocation15_spill] sm:$0xff] }
 0x1c2   : > { %1908 = vpow2.f32 %v1000_v35  ;;  %v1349_v33 = vsel %vm1348_vm4, %v1901_v46, %v1345_v40  ;;  %v1245_v31 = vand.u32 2147483647, %v3291_v39  ;;  %v1247_v47 = vand.u32 2147483648, %v3291_v39 }
 0x1c3   : > { %1910 = vpow2.f32 %v1002_v36  ;;  %v1354_v22 = vsel %vm1351_vm6, %v1353_v32, %v1349_v33  ;;  %v1239_v49 = vmul.f32 %v1905_v10, %v1238_v17  ;;  %vm1242_vm5 = vweird.f32 %v1905_v10 }
 0x1c4   : > { %1912 = vpow2.f32 %v996_v61  ;;  %v1438_v20 = vmul.f32 1.442695, %v1354_v22  ;;  %v3344_v25 = vadd.s32 %v2938_v30, %v1453_v1  ;;  %v1452_v26 = vadd.s32 24, %v2934_v59 }
 0x1c5   : > { %1914 = vpow2.f32 %v998_v62  ;;  %v1240_v41 = vadd.f32 %v1905_v10, %v1239_v49  ;;  %vm1241_vm3 = vweird.f32 %v3291_v39  ;;  %vm692_vm12 = vcmp.eq.f32.partialorder %v670_v34, 0.0  ;;  %v1129_v62 = vpop.xlane.xlu0 %1128 }
 0x1c6   : > { %1916 = vpow2.f32 %v1438_v20  ;;  %vm1243_vm13 = vmor %vm1241_vm3, %vm1242_vm5  ;;  %v1248_v7 = vor.u32 1.1754944e-38, %v1247_v47  ;;  %v3348_v51 = vsel %vm692_vm12, 1.0, %v670_v34  ;;  %vm685_vm11 = vcmp.eq.f32.partialorder %v649_v24, 0.0 }
 0x1c7   : > { %v1907_v60 = vpop.eup %1906  ;;  %v1244_v43 = vsel %vm1243_vm13, %v1905_v10, %v1240_v41  ;;  %vm1246_vm14 = vcmp.eq.f32.partialorder %v1245_v31, 8.507059e+37  ;;  %v1230_v58 = vand.u32 2147483647, %v3329_v16  ;;  %1918 = vrcp.f32 %v3348_v51 }
 0x1c8   : > { %v1909_v44 = vpop.eup %1908  ;;  %vm3983_vm2 = vcmp.ne.f32.partialorder %v2532_v14, 0.0  ;;  %vm1507_vm8 = vcmp.eq.s32.totalorder %v2936_v11, %v3334_v52  ;;  %v1249_v39 = vsel %vm1246_vm14, %v1248_v7, %v1244_v43  ;;  %v1222_v53 = vmul.f32 %v1907_v60, %v3329_v16 }
 0x1c9   : > { %v1071_v23 = vsel %vm3983_vm2, %v3283_v29, 0.0  ;;  %v1911_v12 = vpop.eup %1910  ;;  %vm1508_vm15 = vcmp.eq.s32.totalorder %v2944_v8, %v3334_v52  ;;  %v1424_v46 = vmul.f32 1.442695, %v1249_v39  ;;  %v1232_v18 = vand.u32 2147483648, %v3329_v16 }
 0x1ca   : > { %v3361_v28 = vsel %vm685_vm11, 1.0, %v649_v24  ;;  %v1913_v45 = vpop.eup %1912  ;;  %vm1493_vm0 = vcmp.eq.s32.totalorder %v2936_v11, %v3344_v25  ;;  %vm1494_vm7 = vcmp.eq.s32.totalorder %v2944_v8, %v3344_v25  ;;  %v1223_v14 = vsub.f32 1.0, %v1222_v53  ;;  %v676_v25 = vpop.xlane.xlu2 %675  ;;  %v3997_v53 = vld [vmem:[#allocation23_spill] sm:$0xff] }
 0x1cb   : > { %1920 = vrcp.f32 %v3361_v28  ;;  %v1915_v29 = vpop.eup %1914  ;;  %v3369_v19 = vadd.s32 %v2938_v30, %v1452_v26  ;;  %vm1226_vm1 = vweird.f32 %v3329_v16  ;;  %vm3372_vm6 = vcmp.eq.f32.partialorder %v1230_v58, 8.507059e+37 }
 0x1cc   : > { %1922 = vpow2.f32 %v1424_v46  ;;  %v1917_v9 = vpop.eup %1916  ;;  %v1224_v55 = vmul.f32 %v1907_v60, %v1223_v14  ;;  %vm1227_vm4 = vweird.f32 %v1907_v60  ;;  %v1461_v42 = vadd.s32 96, %v2934_v59  ;;  %v3998_v46 = vld [vmem:[#allocation24_spill] sm:$0xff] }
 0x1cd   : > { %v3377_v54 = vadd.f32 1.0, %v1150_v37  ;;  %v1919_v2 = vpop.eup %1918  ;;  %vm3986_vm5 = vcmp.ne.f32.partialorder %v2549_v27, 0.0  ;;  %v1539_v57 = vsel %vm1507_vm8, %v1917_v9, %v3287_v5  ;;  %v1540_v38 = vsel %vm1508_vm15, %v1917_v9, %v1071_v23  ;;  %v3989_v27 = vld [vmem:[#allocation14_spill] sm:$0xff]  ;;  %vm1228_vm11 = vmor %vm1226_vm1, %vm1227_vm4  ;;  %v673_v23 = vpop.xlane.xlu1 %672 }
 0x1ce   : > { %v1056_v3 = vsel %vm3986_vm5, %v1909_v44, 0.0  ;;  %v1233_v56 = vor.u32 1.1754944e-38, %v1232_v18  ;;  %vm3988_vm3 = vcmp.ne.f32.partialorder %v3987_v50, 0.0  ;;  %1571 = vst [vmem:[%s3049_s30 + $0xb0] sm:$0xff] %v1539_v57  ;;  %v1225_v15 = vadd.f32 %v1907_v60, %v1224_v55  ;;  %v652_v50 = vpop.xlane.xlu0 %651 }
 0x1cf   : > { %v1057_v48 = vsel %vm3988_vm3, %v1911_v12, 0.0  ;;  %v893_v6 = vmul.f32 %v1919_v2, %v3348_v51  ;;  %vm897_vm12 = vweird.f32 %v3348_v51  ;;  %vm3990_vm13 = vcmp.ne.f32.partialorder %v3989_v27, 0.0  ;;  %1572 = vst [vmem:[%s3049_s30 + $0xb8] sm:$0xff] %v1540_v38  ;;  %v3999_v38 = vld [vmem:[#allocation29_spill] sm:$0xff] }
 0x1d0   : > { %v3395_v10 = vsel %vm3990_vm13, %v1913_v45, 0.0  ;;  %v901_v5 = vand.u32 2147483647, %v3348_v51  ;;  %v903_v35 = vand.u32 2147483648, %v3348_v51  ;;  %1924 = vrcp.f32 %v3377_v54 }
 0x1d1   : > { %v1921_v21 = vpop.eup %1920  ;;  %vm3992_vm14 = vcmp.ne.f32.partialorder %v3991_v4, 0.0  ;;  %vm1491_vm2 = vcmp.eq.s32.totalorder %v2936_v11, %v3369_v19  ;;  %vm1492_vm8 = vcmp.eq.s32.totalorder %v2944_v8, %v3369_v19  ;;  %v1229_v36 = vsel %vm1228_vm11, %v1907_v60, %v1225_v15  ;;  %v4000_v15 = vld [vmem:[#allocation30_spill] sm:$0xff] }
 0x1d2   : > { %v1055_v13 = vsel %vm3992_vm14, %v1915_v29, 0.0  ;;  %v894_v16 = vsub.f32 1.0, %v893_v6  ;;  %v796_v52 = vand.u32 2147483647, %v3361_v28  ;;  %v1923_v63 = vpop.eup %1922  ;;  %v1234_v61 = vsel %vm3372_vm6, %v1233_v56, %v1229_v36 }
 0x1d3   : > { %vm898_vm15 = vweird.f32 %v1919_v2  ;;  %v788_v40 = vmul.f32 %v1921_v21, %v3361_v28  ;;  %v798_v1 = vand.u32 2147483648, %v3361_v28  ;;  %v1525_v32 = vsel %vm1493_vm0, %v1923_v63, %v1056_v3 }
 0x1d4   : > { %v1526_v17 = vsel %vm1494_vm7, %v1923_v63, %v1057_v48  ;;  %v1422_v33 = vmul.f32 1.442695, %v1234_v61  ;;  %v895_v31 = vmul.f32 %v1919_v2, %v894_v16  ;;  %1557 = vst [vmem:[%s3049_s30 + $0x40] sm:$0xff] %v1525_v32  ;;  %vm3422_vm1 = vcmp.eq.f32.partialorder %v901_v5, 8.507059e+37  ;;  %vm899_vm0 = vmor %vm897_vm12, %vm898_vm15  ;;  %v1135_v16 = vpop.xlane.xlu2 %1134 }
 0x1d5   : > { %v904_v34 = vor.u32 1.1754944e-38, %v903_v35  ;;  %v789_v22 = vsub.f32 1.0, %v788_v40  ;;  %vm792_vm6 = vweird.f32 %v3361_v28  ;;  %1558 = vst [vmem:[%s3049_s30 + $0x48] sm:$0xff] %v1526_v17  ;;  %v3429_v24 = vadd.s32 %v2938_v30, %v1461_v42 }
 0x1d6   : > { %1926 = vpow2.f32 %v1422_v33  ;;  %v896_v49 = vadd.f32 %v1919_v2, %v895_v31  ;;  %v3431_v20 = vadd.f32 1.0, %v1129_v62  ;;  %v1925_v26 = vpop.eup %1924  ;;  %vm793_vm7 = vweird.f32 %v1921_v21 }
 0x1d7   : > { %v790_v41 = vmul.f32 %v1921_v21, %v789_v22  ;;  %vm3436_vm4 = vcmp.eq.f32.partialorder %v796_v52, 8.507059e+37  ;;  %v1454_v60 = vadd.s32 40, %v2934_v59  ;;  %v799_v58 = vor.u32 1.1754944e-38, %v798_v1  ;;  %vm794_vm12 = vmor %vm792_vm6, %vm793_vm7 }
 0x1d8   : > { %v900_v43 = vsel %vm899_vm0, %v1919_v2, %v896_v49  ;;  %v1357_v44 = vmul.f32 %v1925_v26, %v3377_v54  ;;  %1928 = vrcp.f32 %v3431_v20  ;;  %vm1361_vm5 = vweird.f32 %v3377_v54 }
 0x1d9   : > { %v905_v39 = vsel %vm3422_vm1, %v904_v34, %v900_v43  ;;  %v791_v51 = vadd.f32 %v1921_v21, %v790_v41  ;;  %vm694_vm3 = vcmp.eq.f32.partialorder %v676_v25, 0.0  ;;  %v1365_v45 = vand.u32 2147483647, %v3377_v54 }
 0x1da   : > { %v976_v12 = vmul.f32 %v905_v39, %v3997_v53  ;;  %v977_v18 = vmul.f32 %v905_v39, %v3998_v46  ;;  %v1358_v37 = vsub.f32 1.0, %v1357_v44  ;;  %vm1362_vm13 = vweird.f32 %v1925_v26  ;;  %v1132_v46 = vpop.xlane.xlu1 %1131 }
 0x1db   : > { %v795_v14 = vsel %vm794_vm12, %v1921_v21, %v791_v51  ;;  %v1367_v29 = vand.u32 2147483648, %v3377_v54  ;;  %vm693_vm11 = vcmp.eq.f32.partialorder %v673_v23, 0.0  ;;  %v3454_v2 = vsel %vm694_vm3, 1.0, %v676_v25  ;;  %v4005_v51 = vld [vmem:[#allocation18_spill] sm:$0xff] }
 0x1dc   : > { %v1927_v0 = vpop.eup %1926  ;;  %v1032_v9 = vmul.f32 1.442695, %v976_v12  ;;  %v800_v55 = vsel %vm3436_vm4, %v799_v58, %v795_v14  ;;  %v1359_v42 = vmul.f32 %v1925_v26, %v1358_v37  ;;  %v1034_v57 = vmul.f32 1.442695, %v977_v18 }
 0x1dd   : > { %v1523_v28 = vsel %vm1491_vm2, %v1927_v0, %v3395_v10  ;;  %v1524_v3 = vsel %vm1492_vm8, %v1927_v0, %v1055_v13  ;;  %v962_v56 = vmul.f32 %v800_v55, %v3999_v38  ;;  %v963_v6 = vmul.f32 %v800_v55, %v4000_v15  ;;  %vm1363_vm2 = vmor %vm1361_vm5, %vm1362_vm13  ;;  %v4007_v15 = vld [vmem:[#allocation19_spill] sm:$0xff] }
 0x1de   : > { %v1929_v48 = vpop.eup %1928  ;;  %1555 = vst [vmem:[%s3049_s30 + $0x30] sm:$0xff] %v1523_v28  ;;  %v1360_v27 = vadd.f32 %v1925_v26, %v1359_v42  ;;  %vm1366_vm14 = vcmp.eq.f32.partialorder %v1365_v45, 8.507059e+37  ;;  %v3467_v5 = vadd.s32 %v2938_v30, %v1454_v60  ;;  %1930 = vpow2.f32 %v1032_v9 }
 0x1df   : > { %1556 = vst [vmem:[%s3049_s30 + $0x38] sm:$0xff] %v1524_v3  ;;  %v1004_v10 = vmul.f32 1.442695, %v962_v56  ;;  %v1368_v19 = vor.u32 1.1754944e-38, %v1367_v29  ;;  %v1252_v35 = vmul.f32 %v1929_v48, %v3431_v20  ;;  %1932 = vrcp.f32 %v3454_v2 }
 0x1e0   : > { %v1364_v21 = vsel %vm1363_vm2, %v1925_v26, %v1360_v27  ;;  %v3476_v4 = vsel %vm693_vm11, 1.0, %v673_v23  ;;  %vm686_vm8 = vcmp.eq.f32.partialorder %v652_v50, 0.0  ;;  %1934 = vpow2.f32 %v1034_v57  ;;  %v4003_v23 = vld [vmem:[#allocation17_spill] sm:$0xff]  ;;  %v4009_v27 = vld [vmem:[#allocation20_spill] sm:$0xff] }
 0x1e1   : > { %v1369_v13 = vsel %vm1366_vm14, %v1368_v19, %v1364_v21  ;;  %v1253_v36 = vsub.f32 1.0, %v1252_v35  ;;  %vm1256_vm15 = vweird.f32 %v3431_v20  ;;  %1936 = vpow2.f32 %v1004_v10 }
 0x1e2   : > { %v1006_v52 = vmul.f32 1.442695, %v963_v6  ;;  %v1440_v54 = vmul.f32 1.442695, %v1369_v13  ;;  %v1262_v63 = vand.u32 2147483648, %v3431_v20  ;;  %vm1257_vm1 = vweird.f32 %v1929_v48 }
 0x1e3   : > { %v1254_v61 = vmul.f32 %v1929_v48, %v1253_v36  ;;  %v1260_v40 = vand.u32 2147483647, %v3431_v20  ;;  %1938 = vrcp.f32 %v3476_v4  ;;  %v931_v1 = vand.u32 2147483647, %v3454_v2  ;;  %vm1258_vm7 = vmor %vm1256_vm15, %vm1257_vm1 }
 0x1e4   : > { %1940 = vpow2.f32 %v1440_v54  ;;  %v3484_v62 = vsel %vm686_vm8, 1.0, %v652_v50  ;;  %v3486_v32 = vadd.f32 1.0, %v1135_v16  ;;  %v1931_v17 = vpop.eup %1930  ;;  %vm1509_vm6 = vcmp.eq.s32.totalorder %v2936_v11, %v3429_v24  ;;  %v4011_v16 = vld [vmem:[#allocation34_spill] sm:$0xff] }
 0x1e5   : > { %v1255_v33 = vadd.f32 %v1929_v48, %v1254_v61  ;;  %1942 = vrcp.f32 %v3484_v62  ;;  %v1933_v31 = vpop.eup %1932  ;;  %vm1510_vm0 = vcmp.eq.s32.totalorder %v2944_v8, %v3429_v24  ;;  %v1263_v47 = vor.u32 1.1754944e-38, %v1262_v63 }
 0x1e6   : > { %1944 = vpow2.f32 %v1006_v52  ;;  %v1935_v34 = vpop.eup %1934  ;;  %vm1495_vm4 = vcmp.eq.s32.totalorder %v2936_v11, %v3467_v5  ;;  %vm1496_vm5 = vcmp.eq.s32.totalorder %v2944_v8, %v3467_v5  ;;  %vm1261_vm3 = vcmp.eq.f32.partialorder %v1260_v40, 8.507059e+37 }
 0x1e7   : > { %v1259_v22 = vsel %vm1258_vm7, %v1929_v48, %v1255_v33  ;;  %v923_v49 = vmul.f32 %v1933_v31, %v3454_v2  ;;  %vm927_vm12 = vweird.f32 %v3454_v2  ;;  %v1937_v25 = vpop.eup %1936  ;;  %vm3501_vm13 = vcmp.eq.f32.partialorder %v931_v1, 8.507059e+37 }
 0x1e8   : > { %v1264_v26 = vsel %vm1261_vm3, %v1263_v47, %v1259_v22  ;;  %v933_v20 = vand.u32 2147483648, %v3454_v2  ;;  %1946 = vrcp.f32 %v3486_v32  ;;  %vm912_vm11 = vweird.f32 %v3476_v4 }
 0x1e9   : > { %v1939_v7 = vpop.eup %1938  ;;  %v1426_v60 = vmul.f32 1.442695, %v1264_v26  ;;  %v924_v43 = vsub.f32 1.0, %v923_v49  ;;  %v918_v58 = vand.u32 2147483648, %v3476_v4  ;;  %vm4004_vm14 = vcmp.ne.f32.partialorder %v4003_v23, 0.0  ;;  %v1153_v49 = vpop.xlane.xlu2 %1152  ;;  %v4012_v26 = vld [vmem:[#allocation37_spill] sm:$0xff] }
 0x1ea   : > { %v1941_v44 = vpop.eup %1940  ;;  %v1072_v39 = vsel %vm4004_vm14, %v1931_v17, 0.0  ;;  %vm4006_vm2 = vcmp.ne.f32.partialorder %v4005_v51, 0.0  ;;  %vm928_vm8 = vweird.f32 %v1933_v31  ;;  %v908_v12 = vmul.f32 %v1939_v7, %v3476_v4 }
 0x1eb   : > { %v1073_v53 = vsel %vm4006_vm2, %v1935_v34, 0.0  ;;  %v1943_v18 = vpop.eup %1942  ;;  %v1541_v37 = vsel %vm1509_vm6, %v1941_v44, %v1072_v39  ;;  %1948 = vpow2.f32 %v1426_v60  ;;  %v925_v14 = vmul.f32 %v1933_v31, %v924_v43  ;;  %vm929_vm15 = vmor %vm927_vm12, %vm928_vm8  ;;  %v679_v34 = vpop.xlane.xlu0 %678  ;;  %v4017_v39 = vld [vmem:[#allocation40_spill] sm:$0xff] }
 0x1ec   : > { %v1542_v45 = vsel %vm1510_vm0, %v1941_v44, %v1073_v53  ;;  %v1945_v29 = vpop.eup %1944  ;;  %1573 = vst [vmem:[%s3049_s30 + $0xc0] sm:$0xff] %v1541_v37  ;;  %v934_v0 = vor.u32 1.1754944e-38, %v933_v20  ;;  %v909_v9 = vsub.f32 1.0, %v908_v12  ;;  %v916_v55 = vand.u32 2147483647, %v3476_v4  ;;  %v4016_v44 = vld [vmem:[#allocation35_spill] sm:$0xff] }
 0x1ed   : > { %v803_v42 = vmul.f32 %v1943_v18, %v3484_v62  ;;  %1574 = vst [vmem:[%s3049_s30 + $0xc8] sm:$0xff] %v1542_v45  ;;  %v926_v28 = vadd.f32 %v1933_v31, %v925_v14  ;;  %v919_v3 = vor.u32 1.1754944e-38, %v918_v58  ;;  %v811_v57 = vand.u32 2147483647, %v3484_v62  ;;  %v655_v14 = vpop.xlane.xlu1 %654 }
 0x1ee   : > { %v3525_v38 = vadd.f32 1.0, %v1132_v46  ;;  %v3527_v56 = vpop.eup %1946  ;;  %v910_v24 = vmul.f32 %v1939_v7, %v909_v9  ;;  %vm913_vm1 = vweird.f32 %v1939_v7  ;;  %v813_v48 = vand.u32 2147483648, %v3484_v62 }
 0x1ef   : > { %v804_v50 = vsub.f32 1.0, %v803_v42  ;;  %vm4008_vm6 = vcmp.ne.f32.partialorder %v4007_v15, 0.0  ;;  %vm4010_vm0 = vcmp.ne.f32.partialorder %v4009_v27, 0.0  ;;  %v930_v19 = vsel %vm929_vm15, %v1933_v31, %v926_v28  ;;  %vm914_vm3 = vmor %vm912_vm11, %vm913_vm1 }
 0x1f0   : > { %v1058_v6 = vsel %vm4008_vm6, %v1937_v25, 0.0  ;;  %v1059_v10 = vsel %vm4010_vm0, %v1945_v29, 0.0  ;;  %v1282_v35 = vmul.f32 %v3527_v56, %v3486_v32  ;;  %v935_v2 = vsel %vm3501_vm13, %v934_v0, %v930_v19 }
 0x1f1   : > { %v911_v21 = vadd.f32 %v1939_v7, %v910_v24  ;;  %v805_v13 = vmul.f32 %v1943_v18, %v804_v50  ;;  %vm808_vm7 = vweird.f32 %v1943_v18  ;;  %v1949_v36 = vpop.eup %1948  ;;  %v980_v52 = vmul.f32 %v935_v2, %v4011_v16 }
 0x1f2   : > { %vm807_vm12 = vweird.f32 %v3484_v62  ;;  %v1283_v54 = vsub.f32 1.0, %v1282_v35  ;;  %1950 = vrcp.f32 %v3525_v38  ;;  %v1527_v63 = vsel %vm1495_vm4, %v1949_v36, %v1058_v6 }
 0x1f3   : > { %v1528_v61 = vsel %vm1496_vm5, %v1949_v36, %v1059_v10  ;;  %v915_v40 = vsel %vm914_vm3, %v1939_v7, %v911_v21  ;;  %v806_v1 = vadd.f32 %v1943_v18, %v805_v13  ;;  %1559 = vst [vmem:[%s3049_s30 + $0x50] sm:$0xff] %v1527_v63  ;;  %vm917_vm13 = vcmp.eq.f32.partialorder %v916_v55, 8.507059e+37  ;;  %vm809_vm14 = vmor %vm807_vm12, %vm808_vm7  ;;  %v4013_v7 = vld [vmem:[#allocation39_spill] sm:$0xff] }
 0x1f4   : > { %v814_v4 = vor.u32 1.1754944e-38, %v813_v48  ;;  %v1284_v17 = vmul.f32 %v3527_v56, %v1283_v54  ;;  %1560 = vst [vmem:[%s3049_s30 + $0x58] sm:$0xff] %v1528_v61  ;;  %v920_v62 = vsel %vm917_vm13, %v919_v3, %v915_v40  ;;  %vm812_vm11 = vcmp.eq.f32.partialorder %v811_v57, 8.507059e+37 }
 0x1f5   : > { %v810_v33 = vsel %vm809_vm14, %v1943_v18, %v806_v1  ;;  %v1290_v31 = vand.u32 2147483647, %v3486_v32  ;;  %v1040_v22 = vmul.f32 1.442695, %v980_v52  ;;  %v1292_v5 = vand.u32 2147483648, %v3486_v32  ;;  %v1159_v54 = vpop.xlane.xlu1 %1158 }
 0x1f6   : > { %v815_v47 = vsel %vm812_vm11, %v814_v4, %v810_v33  ;;  %v978_v41 = vmul.f32 %v920_v62, %v4012_v26  ;;  %v1285_v20 = vadd.f32 %v3527_v56, %v1284_v17  ;;  %vm1286_vm4 = vweird.f32 %v3486_v32  ;;  %v4018_v32 = vld [vmem:[#allocation38_spill] sm:$0xff] }
 0x1f7   : > { %vm1287_vm5 = vweird.f32 %v3527_v56  ;;  %v964_v60 = vmul.f32 %v815_v47, %v4013_v7  ;;  %vm3562_vm2 = vcmp.eq.f32.partialorder %v1290_v31, 8.507059e+37  ;;  %vm695_vm8 = vcmp.eq.f32.partialorder %v679_v34, 0.0 }
 0x1f8   : > { %v1951_v25 = vpop.eup %1950  ;;  %v981_v23 = vmul.f32 %v935_v2, %v4016_v44  ;;  %v965_v51 = vmul.f32 %v815_v47, %v4017_v39  ;;  %v1455_v53 = vadd.s32 48, %v2934_v59  ;;  %v3570_v12 = vadd.f32 1.0, %v1153_v49  ;;  %vm3573_vm15 = vmor %vm1286_vm4, %vm1287_vm5  ;;  %v1156_v2 = vpop.xlane.xlu0 %1155 }
 0x1f9   : > { %v1267_v58 = vmul.f32 %v1951_v25, %v3525_v38  ;;  %1952 = vpow2.f32 %v1040_v22  ;;  %v979_v46 = vmul.f32 %v920_v62, %v4018_v32  ;;  %v1293_v37 = vor.u32 1.1754944e-38, %v1292_v5 }
 0x1fa   : > { %v1036_v29 = vmul.f32 1.442695, %v978_v41  ;;  %v1289_v0 = vsel %vm3573_vm15, %v3527_v56, %v1285_v20  ;;  %v1277_v9 = vand.u32 2147483648, %v3525_v38  ;;  %v3581_v55 = vsel %vm695_vm8, 1.0, %v679_v34  ;;  %v4021_v41 = vld [vmem:[#allocation21_spill] sm:$0xff] }
 0x1fb   : > { %v1268_v45 = vsub.f32 1.0, %v1267_v58  ;;  %v1008_v42 = vmul.f32 1.442695, %v964_v60  ;;  %vm1272_vm1 = vweird.f32 %v1951_v25  ;;  %v1275_v3 = vand.u32 2147483647, %v3525_v38  ;;  %v4025_v58 = vld [vmem:[#allocation26_spill] sm:$0xff] }
 0x1fc   : > { %v1042_v57 = vmul.f32 1.442695, %v981_v23  ;;  %v1010_v24 = vmul.f32 1.442695, %v965_v51  ;;  %v3585_v50 = vadd.s32 %v2938_v30, %v1455_v53  ;;  %1954 = vrcp.f32 %v3581_v55  ;;  %v4027_v23 = vld [vmem:[#allocation28_spill] sm:$0xff] }
 0x1fd   : > { %v1269_v28 = vmul.f32 %v1951_v25, %v1268_v45  ;;  %v1294_v48 = vsel %vm3562_vm2, %v1293_v37, %v1289_v0  ;;  %vm1271_vm6 = vweird.f32 %v3525_v38  ;;  %1956 = vrcp.f32 %v3570_v12 }
 0x1fe   : > { %1958 = vpow2.f32 %v1036_v29  ;;  %v1038_v15 = vmul.f32 1.442695, %v979_v46  ;;  %vm1273_vm0 = vmor %vm1271_vm6, %vm1272_vm1  ;;  %v1278_v6 = vor.u32 1.1754944e-38, %v1277_v9  ;;  %vm1276_vm7 = vcmp.eq.f32.partialorder %v1275_v3, 8.507059e+37 }
 0x1ff   : > { %v1270_v56 = vadd.f32 %v1951_v25, %v1269_v28  ;;  %v3592_v27 = vpop.eup %1952  ;;  %1960 = vpow2.f32 %v1008_v42  ;;  %v1430_v19 = vmul.f32 1.442695, %v1294_v48  ;;  %vm1497_vm3 = vcmp.eq.s32.totalorder %v2936_v11, %v3585_v50 }
 0x200   : > { %1962 = vpow2.f32 %v1010_v24  ;;  %vm1498_vm12 = vcmp.eq.s32.totalorder %v2944_v8, %v3585_v50  ;;  %v1462_v13 = vadd.s32 104, %v2934_v59  ;;  %vm687_vm13 = vcmp.eq.f32.partialorder %v655_v14, 0.0 }
 0x201   : > { %v1274_v10 = vsel %vm1273_vm0, %v1951_v25, %v1270_v56  ;;  %1964 = vpow2.f32 %v1042_v57  ;;  %vm1376_vm14 = vweird.f32 %v3570_v12  ;;  %v3601_v52 = vadd.f32 1.0, %v1156_v2 }
 0x202   : > { %v1279_v35 = vsel %vm1276_vm7, %v1278_v6, %v1274_v10  ;;  %v1955_v21 = vpop.eup %1954  ;;  %1966 = vpow2.f32 %v1038_v15  ;;  %v946_v61 = vand.u32 2147483647, %v3581_v55  ;;  %v3605_v1 = vsel %vm687_vm13, 1.0, %v655_v14  ;;  %v4029_v14 = vld [vmem:[#allocation22_spill] sm:$0xff]  ;;  %v4031_v10 = vld [vmem:[#allocation41_spill] sm:$0xff] }
 0x203   : > { %v1428_v38 = vmul.f32 1.442695, %v1279_v35  ;;  %v1957_v36 = vpop.eup %1956  ;;  %v938_v16 = vmul.f32 %v1955_v21, %v3581_v55  ;;  %vm942_vm11 = vweird.f32 %v3581_v55  ;;  %v948_v62 = vand.u32 2147483648, %v3581_v55 }
 0x204   : > { %v1959_v63 = vpop.eup %1958  ;;  %v1372_v40 = vmul.f32 %v1957_v36, %v3570_v12  ;;  %v3611_v31 = vadd.s32 %v2938_v30, %v1462_v13  ;;  %v1380_v34 = vand.u32 2147483647, %v3570_v12  ;;  %v3614_v22 = vadd.f32 1.0, %v1159_v54 }
 0x205   : > { %1968 = vpow2.f32 %v1428_v38  ;;  %v1961_v4 = vpop.eup %1960  ;;  %v939_v17 = vsub.f32 1.0, %v938_v16  ;;  %vm943_vm4 = vweird.f32 %v1955_v21  ;;  %v1382_v25 = vand.u32 2147483648, %v3570_v12 }
 0x206   : > { %1970 = vpow2.f32 %v1430_v19  ;;  %v1963_v33 = vpop.eup %1962  ;;  %v1373_v47 = vsub.f32 1.0, %v1372_v40  ;;  %vm4022_vm5 = vcmp.ne.f32.partialorder %v4021_v41, 0.0  ;;  %vm3624_vm2 = vcmp.eq.f32.partialorder %v946_v61, 8.507059e+37  ;;  %vm944_vm6 = vmor %vm942_vm11, %vm943_vm4 }
 0x207   : > { %1972 = vrcp.f32 %v3605_v1  ;;  %v3616_v5 = vpop.eup %1964  ;;  %v940_v49 = vmul.f32 %v1955_v21, %v939_v17  ;;  %v3622_v20 = vsel %vm4022_vm5, %v1959_v63, 0.0  ;;  %vm1377_vm8 = vweird.f32 %v1957_v36 }
 0x208   : > { %1974 = vrcp.f32 %v3601_v52  ;;  %v1967_v26 = vpop.eup %1966  ;;  %v1374_v60 = vmul.f32 %v1957_v36, %v1373_v47  ;;  %vm4026_vm15 = vcmp.ne.f32.partialorder %v4025_v58, 0.0  ;;  %vm4028_vm1 = vcmp.ne.f32.partialorder %v4027_v23, 0.0  ;;  %vm1378_vm7 = vmor %vm1376_vm14, %vm1377_vm8 }
 0x209   : > { %v1060_v44 = vsel %vm4026_vm15, %v1961_v4, 0.0  ;;  %v1061_v39 = vsel %vm4028_vm1, %v1963_v33, 0.0  ;;  %v941_v51 = vadd.f32 %v1955_v21, %v940_v49  ;;  %v949_v53 = vor.u32 1.1754944e-38, %v948_v62 }
 0x20a   : > { %v1375_v37 = vadd.f32 %v1957_v36, %v1374_v60  ;;  %1976 = vrcp.f32 %v3614_v22  ;;  %vm4030_vm0 = vcmp.ne.f32.partialorder %v4029_v14, 0.0  ;;  %v1383_v9 = vor.u32 1.1754944e-38, %v1382_v25 }
 0x20b   : > { %v1969_v43 = vpop.eup %1968  ;;  %v1075_v29 = vsel %vm4030_vm0, %v1967_v26, 0.0  ;;  %v945_v0 = vsel %vm944_vm6, %v1955_v21, %v941_v51  ;;  %vm1512_vm13 = vcmp.eq.s32.totalorder %v2944_v8, %v3611_v31  ;;  %v3658_v28 = vadd.s32 56, %v2934_v59  ;;  %v4032_v21 = vld [vmem:[#allocation42_spill] sm:$0xff] }
 0x20c   : > { %v3632_v32 = vpop.eup %1970  ;;  %v1529_v46 = vsel %vm1497_vm3, %v1969_v43, %v1060_v44  ;;  %v1530_v18 = vsel %vm1498_vm12, %v1969_v43, %v1061_v39  ;;  %vm1381_vm3 = vcmp.eq.f32.partialorder %v1380_v34, 8.507059e+37  ;;  %v950_v55 = vsel %vm3624_vm2, %v949_v53, %v945_v0  ;;  %v4037_v43 = vld [vmem:[#allocation43_spill] sm:$0xff]  ;;  %v4038_v44 = vld [vmem:[#allocation44_spill] sm:$0xff] }
 0x20d   : > { %v1973_v45 = vpop.eup %1972  ;;  %1561 = vst [vmem:[%s3049_s30 + $0x60] sm:$0xff] %v1529_v46  ;;  %vm1511_vm12 = vcmp.eq.s32.totalorder %v2936_v11, %v3611_v31  ;;  %v1379_v42 = vsel %vm1378_vm7, %v1957_v36, %v1375_v37  ;;  %v826_v24 = vand.u32 2147483647, %v3605_v1  ;;  %v828_v50 = vand.u32 2147483648, %v3605_v1 }
 0x20e   : > { %1562 = vst [vmem:[%s3049_s30 + $0x68] sm:$0xff] %v1530_v18  ;;  %v818_v3 = vmul.f32 %v1973_v45, %v3605_v1  ;;  %v1975_v12 = vpop.eup %1974  ;;  %v1384_v57 = vsel %vm1381_vm3, %v1383_v9, %v1379_v42  ;;  %v1463_v48 = vadd.s32 112, %v2934_v59  ;;  %vm822_vm14 = vweird.f32 %v3605_v1 }
 0x20f   : > { %v1442_v56 = vmul.f32 1.442695, %v1384_v57  ;;  %v1387_v6 = vmul.f32 %v1975_v12, %v3601_v52  ;;  %v982_v19 = vmul.f32 %v950_v55, %v4031_v10  ;;  %vm823_vm11 = vweird.f32 %v1973_v45  ;;  %v4041_v57 = vld [vmem:[#allocation31_spill] sm:$0xff] }
 0x210   : > { %v819_v15 = vsub.f32 1.0, %v818_v3  ;;  %v1395_v35 = vand.u32 2147483647, %v3601_v52  ;;  %v1397_v2 = vand.u32 2147483648, %v3601_v52  ;;  %v1977_v38 = vpop.eup %1976  ;;  %v983_v13 = vmul.f32 %v950_v55, %v4032_v21  ;;  %vm824_vm8 = vmor %vm822_vm14, %vm823_vm11  ;;  %v4047_v21 = vld [vmem:[#allocation36_spill] sm:$0xff] }
 0x211   : > { %1978 = vpow2.f32 %v1442_v56  ;;  %v1388_v16 = vsub.f32 1.0, %v1387_v6  ;;  %vm3670_vm4 = vcmp.eq.f32.partialorder %v826_v24, 8.507059e+37  ;;  %v829_v63 = vor.u32 1.1754944e-38, %v828_v50 }
 0x212   : > { %v820_v36 = vmul.f32 %v1973_v45, %v819_v15  ;;  %vm1391_vm5 = vweird.f32 %v3601_v52  ;;  %v1402_v61 = vmul.f32 %v1977_v38, %v3614_v22  ;;  %vm1392_vm2 = vweird.f32 %v1975_v12 }
 0x213   : > { %v1389_v4 = vmul.f32 %v1975_v12, %v1388_v16  ;;  %v1464_v17 = vadd.s32 120, %v2934_v59  ;;  %v1044_v62 = vmul.f32 1.442695, %v982_v19  ;;  %vm3680_vm15 = vcmp.eq.f32.partialorder %v1395_v35, 8.507059e+37  ;;  %vm1393_vm1 = vmor %vm1391_vm5, %vm1392_vm2 }
 0x214   : > { %v821_v40 = vadd.f32 %v1973_v45, %v820_v36  ;;  %v1398_v47 = vor.u32 1.1754944e-38, %v1397_v2  ;;  %v1403_v34 = vsub.f32 1.0, %v1402_v61  ;;  %v1046_v49 = vmul.f32 1.442695, %v983_v13 }
 0x215   : > { %v1390_v26 = vadd.f32 %v1975_v12, %v1389_v4  ;;  %v1412_v41 = vand.u32 2147483648, %v3614_v22  ;;  %vm1407_vm6 = vweird.f32 %v1977_v38  ;;  %v1410_v7 = vand.u32 2147483647, %v3614_v22 }
 0x216   : > { %v825_v25 = vsel %vm824_vm8, %v1973_v45, %v821_v40  ;;  %v1404_v1 = vmul.f32 %v1977_v38, %v1403_v34  ;;  %vm1406_vm0 = vweird.f32 %v3614_v22  ;;  %1980 = vpow2.f32 %v1044_v62 }
 0x217   : > { %v830_v59 = vsel %vm3670_vm4, %v829_v63, %v825_v25  ;;  %v1979_v60 = vpop.eup %1978  ;;  %v1394_v39 = vsel %vm1393_vm1, %v1975_v12, %v1390_v26  ;;  %vm1408_vm7 = vmor %vm1406_vm0, %vm1407_vm6  ;;  %v1413_v22 = vor.u32 1.1754944e-38, %v1412_v41  ;;  %1982 = vpow2.f32 %v1046_v49 }
 0x218   : > { %v966_v58 = vmul.f32 %v830_v59, %v4037_v43  ;;  %v967_v23 = vmul.f32 %v830_v59, %v4038_v44  ;;  %v1543_v51 = vsel %vm1511_vm12, %v1979_v60, %v3622_v20  ;;  %v1544_v52 = vsel %vm1512_vm13, %v1979_v60, %v1075_v29 }
 0x219   : > { %v1399_v53 = vsel %vm3680_vm15, %v1398_v47, %v1394_v39  ;;  %v1405_v46 = vadd.f32 %v1977_v38, %v1404_v1  ;;  %1575 = vst [vmem:[%s3049_s30 + $0xd0] sm:$0xff] %v1543_v51  ;;  %vm1411_vm3 = vcmp.eq.f32.partialorder %v1410_v7, 8.507059e+37  ;;  %v1476_v14 = vadd.s32 %v2938_v30, %v3658_v28 }
 0x21a   : > { %v1012_v18 = vmul.f32 1.442695, %v966_v58  ;;  %v1014_v37 = vmul.f32 1.442695, %v967_v23  ;;  %1576 = vst [vmem:[%s3049_s30 + $0xd8] sm:$0xff] %v1544_v52  ;;  %v1483_v0 = vadd.s32 %v2938_v30, %v1463_v48  ;;  %v1484_v9 = vadd.s32 %v2938_v30, %v1464_v17  ;;  %v4039_v30 = vld [vmem:[#allocation25_spill] sm:$0xff] }
 0x21b   : > { %v1444_v45 = vmul.f32 1.442695, %v1399_v53  ;;  %v1409_v20 = vsel %vm1408_vm7, %v1977_v38, %v1405_v46  ;;  %vm1499_vm12 = vcmp.eq.s32.totalorder %v2936_v11, %v1476_v14  ;;  %vm1500_vm13 = vcmp.eq.s32.totalorder %v2944_v8, %v1476_v14  ;;  %v4043_v48 = vld [vmem:[#allocation27_spill] sm:$0xff] }
 0x21c   : > { %1984 = vpow2.f32 %v1012_v18  ;;  %v1414_v31 = vsel %vm1411_vm3, %v1413_v22, %v1409_v20  ;;  %v1981_v55 = vpop.eup %1980  ;;  %vm1513_vm14 = vcmp.eq.s32.totalorder %v2936_v11, %v1483_v0  ;;  %vm1514_vm11 = vcmp.eq.s32.totalorder %v2944_v8, %v1483_v0 }
 0x21d   : > { %1986 = vpow2.f32 %v1014_v37  ;;  %v1446_v29 = vmul.f32 1.442695, %v1414_v31  ;;  %v1983_v42 = vpop.eup %1982  ;;  %vm4040_vm4 = vcmp.ne.f32.partialorder %v4039_v30, 0.0  ;;  %vm4042_vm5 = vcmp.ne.f32.partialorder %v4041_v57, 0.0 }
 0x21e   : > { %1988 = vpow2.f32 %v1444_v45  ;;  %v1076_v12 = vsel %vm4040_vm4, %v3592_v27, 0.0  ;;  %vm1515_vm2 = vcmp.eq.s32.totalorder %v2936_v11, %v1484_v9  ;;  %vm4044_vm8 = vcmp.ne.f32.partialorder %v4043_v48, 0.0 }
 0x21f   : > { %1990 = vpow2.f32 %v1446_v29  ;;  %v1077_v56 = vsel %vm4044_vm8, %v3616_v5, 0.0  ;;  %vm1516_vm15 = vcmp.eq.s32.totalorder %v2944_v8, %v1484_v9  ;;  %v1078_v35 = vsel %vm356_vm10, %v1981_v55, 0.0 }
 0x222   : > { %v1985_v3 = vpop.eup %1984 }
 0x223   : > { %v1987_v28 = vpop.eup %1986  ;;  %v1062_v24 = vsel %vm4042_vm5, %v1985_v3, 0.0 }
 0x224   : > { %v1989_v50 = vpop.eup %1988  ;;  %v1063_v6 = vsel %vm341_vm9, %v1987_v28, 0.0  ;;  %v1531_v10 = vsel %vm1499_vm12, %v3632_v32, %v1062_v24  ;;  %vm4048_vm9 = vcmp.ne.f32.partialorder %v4047_v21, 0.0 }
 0x225   : > { %v1991_v27 = vpop.eup %1990  ;;  %v1532_v5 = vsel %vm1500_vm13, %v3632_v32, %v1063_v6  ;;  %1563 = vst [vmem:[%s3049_s30 + $0x70] sm:$0xff] %v1531_v10  ;;  %v1545_v2 = vsel %vm1513_vm14, %v1989_v50, %v1076_v12  ;;  %v1546_v38 = vsel %vm1514_vm11, %v1989_v50, %v1077_v56  ;;  %v1079_v13 = vsel %vm4048_vm9, %v1983_v42, 0.0 }
 0x226   : > { %1564 = vst [vmem:[%s3049_s30 + $0x78] sm:$0xff] %v1532_v5  ;;  %v1547_v36 = vsel %vm1515_vm2, %v1991_v27, %v1078_v35  ;;  %v1548_v16 = vsel %vm1516_vm15, %v1991_v27, %v1079_v13 }
 0x227   : > { %1577 = vst [vmem:[%s3049_s30 + $0xe0] sm:$0xff] %v1545_v2 }
 0x228   : > { %1578 = vst [vmem:[%s3049_s30 + $0xe8] sm:$0xff] %v1546_v38 }
 0x229   : > { %1579 = vst [vmem:[%s3049_s30 + $0xf0] sm:$0xff] %v1547_v36 }
 0x22a   : > { %1580 = vst [vmem:[%s3049_s30 + $0xf8] sm:$0xff] %v1548_v16 }
 0x22b   : > { %2109 = shalt.err (!%p2106_p9)
}
 0x22c   : > { %s2164_s29 = smov 256   ;;  %s2165_s22 = smov 16  }
 0x22d   : > { %1771 = dma.vmem_to_hbm [thread:$0]  (%p2256_p7), %s1596_s16, 4096, %s1598_s2, %s1582_s21, %s2164_s29, %s2164_s29, %s2165_s22  }
 0x22e PF: > { %s1612_s7 = sand.u32 1, %s2144_s12   ;;  %p4049_p12 = scmp.ge.s32.totalorder %s2156_s15, 2 }
 0x22f   : > { %s1613_s10 = scalar_lea.sflag [#allocation4], %s1612_s7 }
 0x230   : > { %p1785_p13 = pnand %p4049_p12, %p2221_p6 }
 0x232   : > { %p1786_p0 = pneg %p1785_p13 }
 0x234   : > { %2139 = dma.done.wait (%p1786_p0), %s1613_s10, 4096  }
 0x235   : > { %2141 = vsyncadd (%p1786_p0), %s1613_s10, 4294963200  ;;  %s4050_s18 = sld [smem:[#allocation13_spill]]  ;;  %p19_p3 = scmp.ge.s32.totalorder %s2239_s26, 4  }
 0x236   : > { %s4051_s12 = smov %s2148_s13  ;;  %s4052_s13 = smov %s2152_s14 }
 0x237   : > { %s4054_s15 = smov %s2239_s26  ;;  %21 = sbr.rel (!%p19_p3) target bundleno = 9 (0x9), region = 94 }
 0x23b   : > { %s4053_s14 = smov %s4050_s18 }
 0x23c   :  { %1619 = vsyncpa [#allocation3], 1 }
 0x23d   :  { %1621 = vsyncpa [#allocation3 + $0x1], 1 }
 0x23e   :  { %1622 = vsyncpa [#allocation6], 1 }
 0x23f   :  { %1624 = vsyncpa [#allocation6 + $0x1], 1 }
 0x240   :  { %1625 = vsyncpa [#allocation4], 1 }
 0x241   :  { %1627 = vsyncpa [#allocation4 + $0x1], 1 }

</bundles_post_ra>
